<compile_context>
chip_gen: v7x
topology: tpu7x:2x2x1
jax: 0.10.0
libtpu: 0.0.40
codegen_flags: <defaults>
</compile_context>

<pallas_src>
import jax
import jax.numpy as jnp
from jax.experimental import pallas as pl
from jax.experimental.pallas import tpu as pltpu


# --------------------- host-side operator construction ----------------------

def _pool1d(L, dtype=jnp.float32):
    """(L//2, L) operator for 1-D average pooling, kernel=2, stride=2."""
    eye = jnp.eye(L, dtype=dtype)
    return 0.5 * (eye[0::2] + eye[1::2])


def _upsample1d(L, dtype=jnp.float32):
    """(2L, L) operator for 1-D bilinear x2 upsampling, align_corners=True."""
    Lo = 2 * L
    if L == 1:
        return jnp.ones((Lo, 1), dtype)
    src = jnp.arange(Lo, dtype=dtype) * (L - 1) / (Lo - 1)
    i0 = jnp.clip(jnp.floor(src).astype(jnp.int32), 0, L - 2)
    frac = src - i0.astype(dtype)
    U = jnp.zeros((Lo, L), dtype)
    U = U.at[jnp.arange(Lo), i0].add(1.0 - frac)
    U = U.at[jnp.arange(Lo), i0 + 1].add(frac)
    return U


def _conv_band_ops(weight, Wl):
    """Concatenated banded operator Acat: (Wl*Cin, K*Wl*Cout).

    Horizontal 'same' zero-padding is folded in (built over the UNPADDED
    width).  Column block dy holds the operator for vertical tap dy, so the
    full conv is  Y = sum_dy Shift[dy] @ (X @ Acat[:, dy]) + bias.
    """
    Cout, Cin, K, _ = weight.shape
    p = K // 2
    dx = jnp.arange(K)[:, None, None]
    wi = jnp.arange(Wl)[None, :, None]
    w = jnp.arange(Wl)[None, None, :]
    S = (wi == w + dx - p).astype(weight.dtype)                  # (K, Wl, Wl)
    # Exact host-side precompute (selection matrix x weights); HIGHEST only
    # here, never inside the kernel.
    A = jnp.einsum('xiw,ocyx->yicwo', S, weight,
                   precision=jax.lax.Precision.HIGHEST)          # (K,Wl,Cin,Wl,Cout)
    A = A.reshape(K, Wl * Cin, Wl * Cout)
    return A.transpose(1, 0, 2).reshape(Wl * Cin, K * Wl * Cout)


def _shift_stack(K, Hh, NB, dtype=jnp.float32):
    """(K, NB*Hh, NB*Hh) block-diagonal vertical shift operators (zero OOB)."""
    p = K // 2
    h = jnp.arange(Hh)
    eye_nb = jnp.eye(NB, dtype=dtype)
    mats = []
    for dy in range(K):
        m = (h[None, :] == h[:, None] + (dy - p)).astype(dtype)  # (Hh, Hh)
        mats.append(jnp.kron(eye_nb, m))
    return jnp.stack(mats, axis=0)


# ------------------------------ fused forward --------------------------------

def feature_pyramid_attention(x, params):
    """Forward of FeaturePyramidAttention (mode='std'), fused into one kernel."""
    (w1, b1), (w1p, b1p), (w3a, b3a), (w3b, b3b), (w5a, b5a), (w5b, b5b), \
        (w7a, b7a), (w7b, b7b) = params
    N, Cin, H, W = x.shape
    Cout = w1.shape[0]
    assert H % 8 == 0 and W % 8 == 0, "mode='std' needs three /2 pooling levels"
    H1, W1, H2, W2, H3, W3 = H // 2, W // 2, H // 4, W // 4, H // 8, W // 8
    f32 = jnp.float32

    # Batch grouping: process NB items per grid step so matmul M = NB*H rows.
    NB = 1
    for nb in range(1, N + 1):
        if N % nb == 0 and nb * H <= 512:
            NB = nb
    G = N // NB
    R0, R1, R2, R3 = NB * H, NB * H1, NB * H2, NB * H3

    # ---- banded conv operators (horizontal padding folded in) ----
    a7a = _conv_band_ops(w7a, W1)           # (W1*Cin , 7*W1*Cout)
    a7b = _conv_band_ops(w7b, W1)           # (W1*Cout, 7*W1*Cout)
    a5a = _conv_band_ops(w5a, W2)
    a5b = _conv_band_ops(w5b, W2)
    a3a = _conv_band_ops(w3a, W3)
    a3b = _conv_band_ops(w3b, W3)
    a1 = _conv_band_ops(w1, W)              # (W*Cin, W*Cout)   (K=1)

    # ---- vertical-tap shift operators (block-diag over NB) ----
    l7 = _shift_stack(7, H1, NB)            # (7, R1, R1)
    l5 = _shift_stack(5, H2, NB)            # (5, R2, R2)
    l3 = _shift_stack(3, H3, NB)            # (3, R3, R3)

    # ---- pooling / upsampling operators ----
    eye_nb = jnp.eye(NB, dtype=f32)
    ph1 = jnp.kron(eye_nb, _pool1d(H))      # (R1, R0)
    ph2 = jnp.kron(eye_nb, _pool1d(H1))     # (R2, R1)
    ph3 = jnp.kron(eye_nb, _pool1d(H2))     # (R3, R2)
    pw1 = jnp.kron(_pool1d(W).T, jnp.eye(Cin, dtype=f32))     # (W*Cin , W1*Cin )
    pw2 = jnp.kron(_pool1d(W1).T, jnp.eye(Cout, dtype=f32))   # (W1*Cout, W2*Cout)
    pw3 = jnp.kron(_pool1d(W2).T, jnp.eye(Cout, dtype=f32))
    uh32 = jnp.kron(eye_nb, _upsample1d(H3))                  # (R2, R3)
    uh21 = jnp.kron(eye_nb, _upsample1d(H2))                  # (R1, R2)
    uh10 = jnp.kron(eye_nb, _upsample1d(H1))                  # (R0, R1)
    uw32 = jnp.kron(_upsample1d(W3).T, jnp.eye(Cout, dtype=f32))
    uw21 = jnp.kron(_upsample1d(W2).T, jnp.eye(Cout, dtype=f32))
    uw10 = jnp.kron(_upsample1d(W1).T, jnp.eye(Cout, dtype=f32))

    # ---- GAP -> conv1p -> broadcast, folded into two operators ----
    gl = jnp.kron(eye_nb, jnp.ones((H, H), f32) / H)          # (R0, R0)
    w1p_m = w1p.reshape(Cout, Cin).T.astype(f32)              # (Cin, Cout)
    gright = jnp.tile(w1p_m, (W, W)) / W                      # (W*Cin, W*Cout)

    # ---- packed bias rows (one constant instead of eight) ----
    bias_pack = jnp.zeros((8, W * Cout), f32)
    for i, (b, ww) in enumerate([(b7a, W1), (b7b, W1), (b5a, W2), (b5b, W2),
                                 (b3a, W3), (b3b, W3), (b1, W), (b1p, W)]):
        bias_pack = bias_pack.at[i, : ww * Cout].set(jnp.tile(b.astype(f32), (ww,)))

    consts = [a7a, a7b, a5a, a5b, a3a, a3b, a1, gright, bias_pack,
              l7, l5, l3, ph1, pw1, ph2, pw2, ph3, pw3,
              uh32, uw32, uh21, uw21, uh10, uw10, gl]
    consts = [c.astype(f32) for c in consts]

    w1o, w2o, w3o, w0o = W1 * Cout, W2 * Cout, W3 * Cout, W * Cout

    def kernel(x_ref,
               a7a_r, a7b_r, a5a_r, a5b_r, a3a_r, a3b_r, a1_r, g_r, bias_r,
               l7_r, l5_r, l3_r,
               ph1_r, pw1_r, ph2_r, pw2_r, ph3_r, pw3_r,
               uh32_r, uw32_r, uh21_r, uw21_r, uh10_r, uw10_r, gl_r,
               o_ref):

        def mm(a, b):
            # Default precision: native MXU rate; f32 accumulation.
            return jnp.dot(a, b, preferred_element_type=jnp.float32)

        def conv(feat, acat_r, l_r, kk, wo, bidx):
            # 'same' KxK conv: one fat band matmul (horizontal taps + channel
            # mix, padding pre-folded), kk tiny block-diagonal vertical-shift
            # matmuls, then the bias row.
            z = mm(feat, acat_r[...])                     # (R, kk*wo)
            out = mm(l_r[0], z[:, 0:wo])
            for dy in range(1, kk):
                out = out + mm(l_r[dy], z[:, dy * wo:(dy + 1) * wo])
            return out + bias_r[bidx:bidx + 1, 0:wo]

        def down(feat, ph_r, pw_r):
            return mm(mm(ph_r[...], feat), pw_r[...])

        def up(feat, uh_r, uw_r):
            return mm(mm(uh_r[...], feat), uw_r[...])

        x0 = x_ref[...]                                   # (R0, W*Cin)

        # down path + first conv of each pyramid level
        xu1 = conv(down(x0, ph1_r, pw1_r), a7a_r, l7_r, 7, w1o, 0)
        xu2 = conv(down(xu1, ph2_r, pw2_r), a5a_r, l5_r, 5, w2o, 2)
        xu3 = conv(down(xu2, ph3_r, pw3_r), a3a_r, l3_r, 3, w3o, 4)

        # full-resolution 1x1 branch
        x1 = mm(x0, a1_r[...]) + bias_r[6:7, 0:w0o]

        # second conv of each pyramid level
        xu1 = conv(xu1, a7b_r, l7_r, 7, w1o, 1)
        xu2 = conv(xu2, a5b_r, l5_r, 5, w2o, 3)
        xu3 = conv(xu3, a3b_r, l3_r, 3, w3o, 5)

        # up path (bilinear x2, align_corners=True) with skip additions
        xu2 = up(xu3, uh32_r, uw32_r) + xu2
        xu1 = up(xu2, uh21_r, uw21_r) + xu1

        # global-pooling branch (GAP -> 1x1 conv -> broadcast), pre-folded
        gp = mm(gl_r[...], mm(x0, g_r[...])) + bias_r[7:8, 0:w0o]

        # final: upsample(xup1) * conv1(x) + gp
        out = up(xu1, uh10_r, uw10_r) * x1 + gp
        o_ref[...] = out.astype(o_ref.dtype)

    # NCHW -> 2-D row slab (N*H, W*Cin), channel minor inside each pixel.
    x_rows = x.astype(f32).transpose(0, 2, 3, 1).reshape(N * H, W * Cin)

    def cspec(a):
        return pl.BlockSpec(a.shape, lambda i, nd=a.ndim: (0,) * nd)

    out_rows = pl.pallas_call(
        kernel,
        out_shape=jax.ShapeDtypeStruct((N * H, W * Cout), f32),
        grid=(G,),
        in_specs=[pl.BlockSpec((R0, W * Cin), lambda i: (i, 0))]
                 + [cspec(c) for c in consts],
        out_specs=pl.BlockSpec((R0, W * Cout), lambda i: (i, 0)),
        compiler_params=pltpu.CompilerParams(
            dimension_semantics=("parallel",),
            vmem_limit_bytes=32 * 1024 * 1024),
    )(x_rows, *consts)

    return out_rows.reshape(N, H, W, Cout).transpose(0, 3, 1, 2)


# --------------------------- plain-JAX reference -----------------------------

def _ref_conv(x, w, b, p):
    y = jax.lax.conv_general_dilated(
        x, w, window_strides=(1, 1), padding=((p, p), (p, p)),
        dimension_numbers=("NCHW", "OIHW", "NCHW"),
        precision=jax.lax.Precision.HIGHEST)
    return y + b[None, :, None, None]


def _ref_down(x):
    N, C, H, W = x.shape
    return x.reshape(N, C, H // 2, 2, W // 2, 2).mean(axis=(3, 5))


def _ref_up_bilinear_ac(x, Ho, Wo):
    N, C, H, W = x.shape

    def grid(o, i):
        s = jnp.arange(o, dtype=x.dtype) * (i - 1) / (o - 1)
        i0 = jnp.clip(jnp.floor(s).astype(jnp.int32), 0, i - 2)
        return i0, i0 + 1, s - i0.astype(x.dtype)

    y0, y1, fy = grid(Ho, H)
    x0, x1, fx = grid(Wo, W)
    a = (x[:, :, y0, :] * (1 - fy)[None, None, :, None]
         + x[:, :, y1, :] * fy[None, None, :, None])
    return a[:, :, :, x0] * (1 - fx) + a[:, :, :, x1] * fx


def feature_pyramid_attention_ref(x, params):
    (w1, b1), (w1p, b1p), (w3a, b3a), (w3b, b3b), (w5a, b5a), (w5b, b5b), \
        (w7a, b7a), (w7b, b7b) = params
    N, Cin, H, W = x.shape
    Cout = w1.shape[0]
    xup1 = _ref_conv(_ref_down(x), w7a, b7a, 3)
    xup2 = _ref_conv(_ref_down(xup1), w5a, b5a, 2)
    xup3 = _ref_conv(_ref_down(xup2), w3a, b3a, 1)
    x1 = _ref_conv(x, w1, b1, 0)
    xup1 = _ref_conv(xup1, w7b, b7b, 3)
    xup2 = _ref_conv(xup2, w5b, b5b, 2)
    xup3 = _ref_conv(xup3, w3b, b3b, 1)
    xup2 = _ref_up_bilinear_ac(xup3, xup2.shape[2], xup2.shape[3]) + xup2
    xup1 = _ref_up_bilinear_ac(xup2, xup1.shape[2], xup1.shape[3]) + xup1
    gp = x.mean(axis=(2, 3), keepdims=True)
    gp = _ref_conv(gp, w1p, b1p, 0)
    gp = jnp.broadcast_to(gp, (N, Cout, H, W))   # bilinear up of 1x1 -> constant
    x1 = _ref_up_bilinear_ac(xup1, H, W) * x1
    return x1 + gp


# ----------------------------------- main -------------------------------------

if __name__ == "__main__":
    N, C, H, W = 2, 4, 16, 16      # batch=2, channels=out_channels=4, spatial=16

    key = jax.random.PRNGKey(0)
    kx, *kw = jax.random.split(key, 17)

    def conv_params(keys, cout, cin, ksz):
        k1, k2 = keys
        bound = 1.0 / float((cin * ksz * ksz) ** 0.5)
        w = jax.random.uniform(k1, (cout, cin, ksz, ksz), jnp.float32, -bound, bound)
        b = jax.random.uniform(k2, (cout,), jnp.float32, -bound, bound)
        return w, b

    params = (
        conv_params(kw[0:2], C, C, 1),     # conv1
        conv_params(kw[2:4], C, C, 1),     # conv1p
        conv_params(kw[4:6], C, C, 3),     # conv3a
        conv_params(kw[6:8], C, C, 3),     # conv3b
        conv_params(kw[8:10], C, C, 5),    # conv5a
        conv_params(kw[10:12], C, C, 5),   # conv5b
        conv_params(kw[12:14], C, C, 7),   # conv7a
        conv_params(kw[14:16], C, C, 7),   # conv7b
    )
    x = jax.random.normal(kx, (N, C, H, W), jnp.float32)

    fwd = jax.jit(feature_pyramid_attention)
    out = jax.block_until_ready(fwd(x, params))
    ref = jax.block_until_ready(feature_pyramid_attention_ref(x, params))

    assert out.shape == (N, C, H, W), out.shape
    max_err = float(jnp.max(jnp.abs(out - ref)))
    # In-kernel matmuls now run at the MXU's native (bf16-input, f32-accumulate)
    # precision per the perf review, so compare with a matching tolerance.
    assert jnp.allclose(out, ref, atol=2e-2, rtol=2e-2), max_err

    print("KERNEL_OK")
</pallas_src>

<mosaic_0001>
module attributes {stable_mosaic.version = 11 : i64} {
  func.func private @main(%arg0: i32) attributes {dimension_semantics = [#tpu.dimension_semantics<core_parallel>], iteration_bounds = array<i64: 2>, tpu.core_type = #tpu.core_type<sc_scalar_subcore>, window_params = []} {
    return
  }
}

module attributes {stable_mosaic.version = 11 : i64} {
  func.func private @main(%arg0: i32) attributes {dimension_semantics = [#tpu.dimension_semantics<core_parallel>], iteration_bounds = array<i64: 2>, tpu.core_type = #tpu.core_type<sc_scalar_subcore>, window_params = []} {
    return
  }
}

module attributes {stable_mosaic.version = 11 : i64} {
  func.func @kernel(%arg0: i32, %arg1: memref<32x64xf32, #tpu.memory_space<vmem>>, %arg2: memref<32x224xf32, #tpu.memory_space<vmem>>, %arg3: memref<32x224xf32, #tpu.memory_space<vmem>>, %arg4: memref<16x80xf32, #tpu.memory_space<vmem>>, %arg5: memref<16x80xf32, #tpu.memory_space<vmem>>, %arg6: memref<8x24xf32, #tpu.memory_space<vmem>>, %arg7: memref<8x24xf32, #tpu.memory_space<vmem>>, %arg8: memref<64x64xf32, #tpu.memory_space<vmem>>, %arg9: memref<64x64xf32, #tpu.memory_space<vmem>>, %arg10: memref<8x64xf32, #tpu.memory_space<vmem>>, %arg11: memref<7x16x16xf32, #tpu.memory_space<vmem>>, %arg12: memref<5x8x8xf32, #tpu.memory_space<vmem>>, %arg13: memref<3x4x4xf32, #tpu.memory_space<vmem>>, %arg14: memref<16x32xf32, #tpu.memory_space<vmem>>, %arg15: memref<64x32xf32, #tpu.memory_space<vmem>>, %arg16: memref<8x16xf32, #tpu.memory_space<vmem>>, %arg17: memref<32x16xf32, #tpu.memory_space<vmem>>, %arg18: memref<4x8xf32, #tpu.memory_space<vmem>>, %arg19: memref<16x8xf32, #tpu.memory_space<vmem>>, %arg20: memref<8x4xf32, #tpu.memory_space<vmem>>, %arg21: memref<8x16xf32, #tpu.memory_space<vmem>>, %arg22: memref<16x8xf32, #tpu.memory_space<vmem>>, %arg23: memref<16x32xf32, #tpu.memory_space<vmem>>, %arg24: memref<32x16xf32, #tpu.memory_space<vmem>>, %arg25: memref<32x64xf32, #tpu.memory_space<vmem>>, %arg26: memref<32x32xf32, #tpu.memory_space<vmem>>, %arg27: memref<32x64xf32, #tpu.memory_space<vmem>>) attributes {dimension_semantics = [#tpu.dimension_semantics<parallel>], iteration_bounds = array<i64: 1>, scalar_prefetch = 0 : i64, scratch_operands = 0 : i64, tpu.core_type = #tpu.core_type<tc>, window_params = [{transform_indices = @transform_0, window_bounds = array<i64: 32, 64>}, {pipeline_mode = #tpu.pipeline_mode<synchronous>, transform_indices = @transform_1, window_bounds = array<i64: 32, 224>}, {pipeline_mode = #tpu.pipeline_mode<synchronous>, transform_indices = @transform_2, window_bounds = array<i64: 32, 224>}, {pipeline_mode = #tpu.pipeline_mode<synchronous>, transform_indices = @transform_3, window_bounds = array<i64: 16, 80>}, {pipeline_mode = #tpu.pipeline_mode<synchronous>, transform_indices = @transform_4, window_bounds = array<i64: 16, 80>}, {pipeline_mode = #tpu.pipeline_mode<synchronous>, transform_indices = @transform_5, window_bounds = array<i64: 8, 24>}, {pipeline_mode = #tpu.pipeline_mode<synchronous>, transform_indices = @transform_6, window_bounds = array<i64: 8, 24>}, {pipeline_mode = #tpu.pipeline_mode<synchronous>, transform_indices = @transform_7, window_bounds = array<i64: 64, 64>}, {pipeline_mode = #tpu.pipeline_mode<synchronous>, transform_indices = @transform_8, window_bounds = array<i64: 64, 64>}, {pipeline_mode = #tpu.pipeline_mode<synchronous>, transform_indices = @transform_9, window_bounds = array<i64: 8, 64>}, {pipeline_mode = #tpu.pipeline_mode<synchronous>, transform_indices = @transform_10, window_bounds = array<i64: 7, 16, 16>}, {pipeline_mode = #tpu.pipeline_mode<synchronous>, transform_indices = @transform_11, window_bounds = array<i64: 5, 8, 8>}, {pipeline_mode = #tpu.pipeline_mode<synchronous>, transform_indices = @transform_12, window_bounds = array<i64: 3, 4, 4>}, {pipeline_mode = #tpu.pipeline_mode<synchronous>, transform_indices = @transform_13, window_bounds = array<i64: 16, 32>}, {pipeline_mode = #tpu.pipeline_mode<synchronous>, transform_indices = @transform_14, window_bounds = array<i64: 64, 32>}, {pipeline_mode = #tpu.pipeline_mode<synchronous>, transform_indices = @transform_15, window_bounds = array<i64: 8, 16>}, {pipeline_mode = #tpu.pipeline_mode<synchronous>, transform_indices = @transform_16, window_bounds = array<i64: 32, 16>}, {pipeline_mode = #tpu.pipeline_mode<synchronous>, transform_indices = @transform_17, window_bounds = array<i64: 4, 8>}, {pipeline_mode = #tpu.pipeline_mode<synchronous>, transform_indices = @transform_18, window_bounds = array<i64: 16, 8>}, {pipeline_mode = #tpu.pipeline_mode<synchronous>, transform_indices = @transform_19, window_bounds = array<i64: 8, 4>}, {pipeline_mode = #tpu.pipeline_mode<synchronous>, transform_indices = @transform_20, window_bounds = array<i64: 8, 16>}, {pipeline_mode = #tpu.pipeline_mode<synchronous>, transform_indices = @transform_21, window_bounds = array<i64: 16, 8>}, {pipeline_mode = #tpu.pipeline_mode<synchronous>, transform_indices = @transform_22, window_bounds = array<i64: 16, 32>}, {pipeline_mode = #tpu.pipeline_mode<synchronous>, transform_indices = @transform_23, window_bounds = array<i64: 32, 16>}, {pipeline_mode = #tpu.pipeline_mode<synchronous>, transform_indices = @transform_24, window_bounds = array<i64: 32, 64>}, {pipeline_mode = #tpu.pipeline_mode<synchronous>, transform_indices = @transform_25, window_bounds = array<i64: 32, 32>}, {transform_indices = @transform_26, window_bounds = array<i64: 32, 64>}]} {
    %c0 = arith.constant 0 : index
    %c0_0 = arith.constant 0 : index
    %0 = vector.load %arg1[%c0, %c0_0] : memref<32x64xf32, #tpu.memory_space<vmem>>, vector<32x64xf32>
    %c0_1 = arith.constant 0 : index
    %c0_2 = arith.constant 0 : index
    %1 = vector.load %arg14[%c0_1, %c0_2] : memref<16x32xf32, #tpu.memory_space<vmem>>, vector<16x32xf32>
    %cst = arith.constant dense<0.000000e+00> : vector<16x64xf32>
    %2 = tpu.matmul %1, %0, %cst {dimension_numbers = #tpu.dot_dimension_numbers<[1], [0], [0], [1], [0, 0, 1, 1], [], []>} : vector<16x32xf32>, vector<32x64xf32>, vector<16x64xf32> -> vector<16x64xf32>
    %c0_3 = arith.constant 0 : index
    %c0_4 = arith.constant 0 : index
    %3 = vector.load %arg15[%c0_3, %c0_4] : memref<64x32xf32, #tpu.memory_space<vmem>>, vector<64x32xf32>
    %cst_5 = arith.constant dense<0.000000e+00> : vector<16x32xf32>
    %4 = tpu.matmul %2, %3, %cst_5 {dimension_numbers = #tpu.dot_dimension_numbers<[1], [0], [0], [1], [0, 0, 1, 1], [], []>} : vector<16x64xf32>, vector<64x32xf32>, vector<16x32xf32> -> vector<16x32xf32>
    %c0_6 = arith.constant 0 : index
    %c0_7 = arith.constant 0 : index
    %5 = vector.load %arg2[%c0_6, %c0_7] : memref<32x224xf32, #tpu.memory_space<vmem>>, vector<32x224xf32>
    %cst_8 = arith.constant dense<0.000000e+00> : vector<16x224xf32>
    %6 = tpu.matmul %4, %5, %cst_8 {dimension_numbers = #tpu.dot_dimension_numbers<[1], [0], [0], [1], [0, 0, 1, 1], [], []>} : vector<16x32xf32>, vector<32x224xf32>, vector<16x224xf32> -> vector<16x224xf32>
    %c0_9 = arith.constant 0 : index
    %c0_10 = arith.constant 0 : index
    %c0_11 = arith.constant 0 : index
    %7 = vector.load %arg11[%c0_9, %c0_10, %c0_11] : memref<7x16x16xf32, #tpu.memory_space<vmem>>, vector<1x16x16xf32>
    %8 = vector.shape_cast %7 : vector<1x16x16xf32> to vector<16x16xf32>
    %9 = vector.extract_strided_slice %6 {offsets = [0, 0], sizes = [16, 32], strides = [1, 1]} : vector<16x224xf32> to vector<16x32xf32>
    %cst_12 = arith.constant dense<0.000000e+00> : vector<16x32xf32>
    %10 = tpu.matmul %8, %9, %cst_12 {dimension_numbers = #tpu.dot_dimension_numbers<[1], [0], [0], [1], [0, 0, 1, 1], [], []>} : vector<16x16xf32>, vector<16x32xf32>, vector<16x32xf32> -> vector<16x32xf32>
    %c1 = arith.constant 1 : index
    %c0_13 = arith.constant 0 : index
    %c0_14 = arith.constant 0 : index
    %11 = vector.load %arg11[%c1, %c0_13, %c0_14] : memref<7x16x16xf32, #tpu.memory_space<vmem>>, vector<1x16x16xf32>
    %12 = vector.shape_cast %11 : vector<1x16x16xf32> to vector<16x16xf32>
    %13 = vector.extract_strided_slice %6 {offsets = [0, 32], sizes = [16, 32], strides = [1, 1]} : vector<16x224xf32> to vector<16x32xf32>
    %cst_15 = arith.constant dense<0.000000e+00> : vector<16x32xf32>
    %14 = tpu.matmul %12, %13, %cst_15 {dimension_numbers = #tpu.dot_dimension_numbers<[1], [0], [0], [1], [0, 0, 1, 1], [], []>} : vector<16x16xf32>, vector<16x32xf32>, vector<16x32xf32> -> vector<16x32xf32>
    %15 = arith.addf %10, %14 : vector<16x32xf32>
    %c2 = arith.constant 2 : index
    %c0_16 = arith.constant 0 : index
    %c0_17 = arith.constant 0 : index
    %16 = vector.load %arg11[%c2, %c0_16, %c0_17] : memref<7x16x16xf32, #tpu.memory_space<vmem>>, vector<1x16x16xf32>
    %17 = vector.shape_cast %16 : vector<1x16x16xf32> to vector<16x16xf32>
    %18 = vector.extract_strided_slice %6 {offsets = [0, 64], sizes = [16, 32], strides = [1, 1]} : vector<16x224xf32> to vector<16x32xf32>
    %cst_18 = arith.constant dense<0.000000e+00> : vector<16x32xf32>
    %19 = tpu.matmul %17, %18, %cst_18 {dimension_numbers = #tpu.dot_dimension_numbers<[1], [0], [0], [1], [0, 0, 1, 1], [], []>} : vector<16x16xf32>, vector<16x32xf32>, vector<16x32xf32> -> vector<16x32xf32>
    %20 = arith.addf %15, %19 : vector<16x32xf32>
    %c3 = arith.constant 3 : index
    %c0_19 = arith.constant 0 : index
    %c0_20 = arith.constant 0 : index
    %21 = vector.load %arg11[%c3, %c0_19, %c0_20] : memref<7x16x16xf32, #tpu.memory_space<vmem>>, vector<1x16x16xf32>
    %22 = vector.shape_cast %21 : vector<1x16x16xf32> to vector<16x16xf32>
    %23 = vector.extract_strided_slice %6 {offsets = [0, 96], sizes = [16, 32], strides = [1, 1]} : vector<16x224xf32> to vector<16x32xf32>
    %cst_21 = arith.constant dense<0.000000e+00> : vector<16x32xf32>
    %24 = tpu.matmul %22, %23, %cst_21 {dimension_numbers = #tpu.dot_dimension_numbers<[1], [0], [0], [1], [0, 0, 1, 1], [], []>} : vector<16x16xf32>, vector<16x32xf32>, vector<16x32xf32> -> vector<16x32xf32>
    %25 = arith.addf %20, %24 : vector<16x32xf32>
    %c4 = arith.constant 4 : index
    %c0_22 = arith.constant 0 : index
    %c0_23 = arith.constant 0 : index
    %26 = vector.load %arg11[%c4, %c0_22, %c0_23] : memref<7x16x16xf32, #tpu.memory_space<vmem>>, vector<1x16x16xf32>
    %27 = vector.shape_cast %26 : vector<1x16x16xf32> to vector<16x16xf32>
    %28 = vector.extract_strided_slice %6 {offsets = [0, 128], sizes = [16, 32], strides = [1, 1]} : vector<16x224xf32> to vector<16x32xf32>
    %cst_24 = arith.constant dense<0.000000e+00> : vector<16x32xf32>
    %29 = tpu.matmul %27, %28, %cst_24 {dimension_numbers = #tpu.dot_dimension_numbers<[1], [0], [0], [1], [0, 0, 1, 1], [], []>} : vector<16x16xf32>, vector<16x32xf32>, vector<16x32xf32> -> vector<16x32xf32>
    %30 = arith.addf %25, %29 : vector<16x32xf32>
    %c5 = arith.constant 5 : index
    %c0_25 = arith.constant 0 : index
    %c0_26 = arith.constant 0 : index
    %31 = vector.load %arg11[%c5, %c0_25, %c0_26] : memref<7x16x16xf32, #tpu.memory_space<vmem>>, vector<1x16x16xf32>
    %32 = vector.shape_cast %31 : vector<1x16x16xf32> to vector<16x16xf32>
    %33 = vector.extract_strided_slice %6 {offsets = [0, 160], sizes = [16, 32], strides = [1, 1]} : vector<16x224xf32> to vector<16x32xf32>
    %cst_27 = arith.constant dense<0.000000e+00> : vector<16x32xf32>
    %34 = tpu.matmul %32, %33, %cst_27 {dimension_numbers = #tpu.dot_dimension_numbers<[1], [0], [0], [1], [0, 0, 1, 1], [], []>} : vector<16x16xf32>, vector<16x32xf32>, vector<16x32xf32> -> vector<16x32xf32>
    %35 = arith.addf %30, %34 : vector<16x32xf32>
    %c6 = arith.constant 6 : index
    %c0_28 = arith.constant 0 : index
    %c0_29 = arith.constant 0 : index
    %36 = vector.load %arg11[%c6, %c0_28, %c0_29] : memref<7x16x16xf32, #tpu.memory_space<vmem>>, vector<1x16x16xf32>
    %37 = vector.shape_cast %36 : vector<1x16x16xf32> to vector<16x16xf32>
    %38 = vector.extract_strided_slice %6 {offsets = [0, 192], sizes = [16, 32], strides = [1, 1]} : vector<16x224xf32> to vector<16x32xf32>
    %cst_30 = arith.constant dense<0.000000e+00> : vector<16x32xf32>
    %39 = tpu.matmul %37, %38, %cst_30 {dimension_numbers = #tpu.dot_dimension_numbers<[1], [0], [0], [1], [0, 0, 1, 1], [], []>} : vector<16x16xf32>, vector<16x32xf32>, vector<16x32xf32> -> vector<16x32xf32>
    %40 = arith.addf %35, %39 : vector<16x32xf32>
    %c0_31 = arith.constant 0 : index
    %c0_32 = arith.constant 0 : index
    %41 = vector.load %arg10[%c0_31, %c0_32] : memref<8x64xf32, #tpu.memory_space<vmem>>, vector<1x32xf32>
    %42 = vector.broadcast %41 : vector<1x32xf32> to vector<16x32xf32>
    %43 = arith.addf %40, %42 : vector<16x32xf32>
    %c0_33 = arith.constant 0 : index
    %c0_34 = arith.constant 0 : index
    %44 = vector.load %arg16[%c0_33, %c0_34] : memref<8x16xf32, #tpu.memory_space<vmem>>, vector<8x16xf32>
    %cst_35 = arith.constant dense<0.000000e+00> : vector<8x32xf32>
    %45 = tpu.matmul %44, %43, %cst_35 {dimension_numbers = #tpu.dot_dimension_numbers<[1], [0], [0], [1], [0, 0, 1, 1], [], []>} : vector<8x16xf32>, vector<16x32xf32>, vector<8x32xf32> -> vector<8x32xf32>
    %c0_36 = arith.constant 0 : index
    %c0_37 = arith.constant 0 : index
    %46 = vector.load %arg17[%c0_36, %c0_37] : memref<32x16xf32, #tpu.memory_space<vmem>>, vector<32x16xf32>
    %cst_38 = arith.constant dense<0.000000e+00> : vector<8x16xf32>
    %47 = tpu.matmul %45, %46, %cst_38 {dimension_numbers = #tpu.dot_dimension_numbers<[1], [0], [0], [1], [0, 0, 1, 1], [], []>} : vector<8x32xf32>, vector<32x16xf32>, vector<8x16xf32> -> vector<8x16xf32>
    %c0_39 = arith.constant 0 : index
    %c0_40 = arith.constant 0 : index
    %48 = vector.load %arg4[%c0_39, %c0_40] : memref<16x80xf32, #tpu.memory_space<vmem>>, vector<16x80xf32>
    %cst_41 = arith.constant dense<0.000000e+00> : vector<8x80xf32>
    %49 = tpu.matmul %47, %48, %cst_41 {dimension_numbers = #tpu.dot_dimension_numbers<[1], [0], [0], [1], [0, 0, 1, 1], [], []>} : vector<8x16xf32>, vector<16x80xf32>, vector<8x80xf32> -> vector<8x80xf32>
    %c0_42 = arith.constant 0 : index
    %c0_43 = arith.constant 0 : index
    %c0_44 = arith.constant 0 : index
    %50 = vector.load %arg12[%c0_42, %c0_43, %c0_44] : memref<5x8x8xf32, #tpu.memory_space<vmem>>, vector<1x8x8xf32>
    %51 = vector.shape_cast %50 : vector<1x8x8xf32> to vector<8x8xf32>
    %52 = vector.extract_strided_slice %49 {offsets = [0, 0], sizes = [8, 16], strides = [1, 1]} : vector<8x80xf32> to vector<8x16xf32>
    %cst_45 = arith.constant dense<0.000000e+00> : vector<8x16xf32>
    %53 = tpu.matmul %51, %52, %cst_45 {dimension_numbers = #tpu.dot_dimension_numbers<[1], [0], [0], [1], [0, 0, 1, 1], [], []>} : vector<8x8xf32>, vector<8x16xf32>, vector<8x16xf32> -> vector<8x16xf32>
    %c1_46 = arith.constant 1 : index
    %c0_47 = arith.constant 0 : index
    %c0_48 = arith.constant 0 : index
    %54 = vector.load %arg12[%c1_46, %c0_47, %c0_48] : memref<5x8x8xf32, #tpu.memory_space<vmem>>, vector<1x8x8xf32>
    %55 = vector.shape_cast %54 : vector<1x8x8xf32> to vector<8x8xf32>
    %56 = vector.extract_strided_slice %49 {offsets = [0, 16], sizes = [8, 16], strides = [1, 1]} : vector<8x80xf32> to vector<8x16xf32>
    %cst_49 = arith.constant dense<0.000000e+00> : vector<8x16xf32>
    %57 = tpu.matmul %55, %56, %cst_49 {dimension_numbers = #tpu.dot_dimension_numbers<[1], [0], [0], [1], [0, 0, 1, 1], [], []>} : vector<8x8xf32>, vector<8x16xf32>, vector<8x16xf32> -> vector<8x16xf32>
    %58 = arith.addf %53, %57 : vector<8x16xf32>
    %c2_50 = arith.constant 2 : index
    %c0_51 = arith.constant 0 : index
    %c0_52 = arith.constant 0 : index
    %59 = vector.load %arg12[%c2_50, %c0_51, %c0_52] : memref<5x8x8xf32, #tpu.memory_space<vmem>>, vector<1x8x8xf32>
    %60 = vector.shape_cast %59 : vector<1x8x8xf32> to vector<8x8xf32>
    %61 = vector.extract_strided_slice %49 {offsets = [0, 32], sizes = [8, 16], strides = [1, 1]} : vector<8x80xf32> to vector<8x16xf32>
    %cst_53 = arith.constant dense<0.000000e+00> : vector<8x16xf32>
    %62 = tpu.matmul %60, %61, %cst_53 {dimension_numbers = #tpu.dot_dimension_numbers<[1], [0], [0], [1], [0, 0, 1, 1], [], []>} : vector<8x8xf32>, vector<8x16xf32>, vector<8x16xf32> -> vector<8x16xf32>
    %63 = arith.addf %58, %62 : vector<8x16xf32>
    %c3_54 = arith.constant 3 : index
    %c0_55 = arith.constant 0 : index
    %c0_56 = arith.constant 0 : index
    %64 = vector.load %arg12[%c3_54, %c0_55, %c0_56] : memref<5x8x8xf32, #tpu.memory_space<vmem>>, vector<1x8x8xf32>
    %65 = vector.shape_cast %64 : vector<1x8x8xf32> to vector<8x8xf32>
    %66 = vector.extract_strided_slice %49 {offsets = [0, 48], sizes = [8, 16], strides = [1, 1]} : vector<8x80xf32> to vector<8x16xf32>
    %cst_57 = arith.constant dense<0.000000e+00> : vector<8x16xf32>
    %67 = tpu.matmul %65, %66, %cst_57 {dimension_numbers = #tpu.dot_dimension_numbers<[1], [0], [0], [1], [0, 0, 1, 1], [], []>} : vector<8x8xf32>, vector<8x16xf32>, vector<8x16xf32> -> vector<8x16xf32>
    %68 = arith.addf %63, %67 : vector<8x16xf32>
    %c4_58 = arith.constant 4 : index
    %c0_59 = arith.constant 0 : index
    %c0_60 = arith.constant 0 : index
    %69 = vector.load %arg12[%c4_58, %c0_59, %c0_60] : memref<5x8x8xf32, #tpu.memory_space<vmem>>, vector<1x8x8xf32>
    %70 = vector.shape_cast %69 : vector<1x8x8xf32> to vector<8x8xf32>
    %71 = vector.extract_strided_slice %49 {offsets = [0, 64], sizes = [8, 16], strides = [1, 1]} : vector<8x80xf32> to vector<8x16xf32>
    %cst_61 = arith.constant dense<0.000000e+00> : vector<8x16xf32>
    %72 = tpu.matmul %70, %71, %cst_61 {dimension_numbers = #tpu.dot_dimension_numbers<[1], [0], [0], [1], [0, 0, 1, 1], [], []>} : vector<8x8xf32>, vector<8x16xf32>, vector<8x16xf32> -> vector<8x16xf32>
    %73 = arith.addf %68, %72 : vector<8x16xf32>
    %c2_62 = arith.constant 2 : index
    %c0_63 = arith.constant 0 : index
    %74 = vector.load %arg10[%c2_62, %c0_63] : memref<8x64xf32, #tpu.memory_space<vmem>>, vector<1x16xf32>
    %75 = vector.broadcast %74 : vector<1x16xf32> to vector<8x16xf32>
    %76 = arith.addf %73, %75 : vector<8x16xf32>
    %c0_64 = arith.constant 0 : index
    %c0_65 = arith.constant 0 : index
    %77 = vector.load %arg18[%c0_64, %c0_65] : memref<4x8xf32, #tpu.memory_space<vmem>>, vector<4x8xf32>
    %cst_66 = arith.constant dense<0.000000e+00> : vector<4x16xf32>
    %78 = tpu.matmul %77, %76, %cst_66 {dimension_numbers = #tpu.dot_dimension_numbers<[1], [0], [0], [1], [0, 0, 1, 1], [], []>} : vector<4x8xf32>, vector<8x16xf32>, vector<4x16xf32> -> vector<4x16xf32>
    %c0_67 = arith.constant 0 : index
    %c0_68 = arith.constant 0 : index
    %79 = vector.load %arg19[%c0_67, %c0_68] : memref<16x8xf32, #tpu.memory_space<vmem>>, vector<16x8xf32>
    %cst_69 = arith.constant dense<0.000000e+00> : vector<4x8xf32>
    %80 = tpu.matmul %78, %79, %cst_69 {dimension_numbers = #tpu.dot_dimension_numbers<[1], [0], [0], [1], [0, 0, 1, 1], [], []>} : vector<4x16xf32>, vector<16x8xf32>, vector<4x8xf32> -> vector<4x8xf32>
    %c0_70 = arith.constant 0 : index
    %c0_71 = arith.constant 0 : index
    %81 = vector.load %arg6[%c0_70, %c0_71] : memref<8x24xf32, #tpu.memory_space<vmem>>, vector<8x24xf32>
    %cst_72 = arith.constant dense<0.000000e+00> : vector<4x24xf32>
    %82 = tpu.matmul %80, %81, %cst_72 {dimension_numbers = #tpu.dot_dimension_numbers<[1], [0], [0], [1], [0, 0, 1, 1], [], []>} : vector<4x8xf32>, vector<8x24xf32>, vector<4x24xf32> -> vector<4x24xf32>
    %c0_73 = arith.constant 0 : index
    %c0_74 = arith.constant 0 : index
    %c0_75 = arith.constant 0 : index
    %83 = vector.load %arg13[%c0_73, %c0_74, %c0_75] : memref<3x4x4xf32, #tpu.memory_space<vmem>>, vector<1x4x4xf32>
    %84 = vector.shape_cast %83 : vector<1x4x4xf32> to vector<4x4xf32>
    %85 = vector.extract_strided_slice %82 {offsets = [0, 0], sizes = [4, 8], strides = [1, 1]} : vector<4x24xf32> to vector<4x8xf32>
    %cst_76 = arith.constant dense<0.000000e+00> : vector<4x8xf32>
    %86 = tpu.matmul %84, %85, %cst_76 {dimension_numbers = #tpu.dot_dimension_numbers<[1], [0], [0], [1], [0, 0, 1, 1], [], []>} : vector<4x4xf32>, vector<4x8xf32>, vector<4x8xf32> -> vector<4x8xf32>
    %c1_77 = arith.constant 1 : index
    %c0_78 = arith.constant 0 : index
    %c0_79 = arith.constant 0 : index
    %87 = vector.load %arg13[%c1_77, %c0_78, %c0_79] : memref<3x4x4xf32, #tpu.memory_space<vmem>>, vector<1x4x4xf32>
    %88 = vector.shape_cast %87 : vector<1x4x4xf32> to vector<4x4xf32>
    %89 = vector.extract_strided_slice %82 {offsets = [0, 8], sizes = [4, 8], strides = [1, 1]} : vector<4x24xf32> to vector<4x8xf32>
    %cst_80 = arith.constant dense<0.000000e+00> : vector<4x8xf32>
    %90 = tpu.matmul %88, %89, %cst_80 {dimension_numbers = #tpu.dot_dimension_numbers<[1], [0], [0], [1], [0, 0, 1, 1], [], []>} : vector<4x4xf32>, vector<4x8xf32>, vector<4x8xf32> -> vector<4x8xf32>
    %91 = arith.addf %86, %90 : vector<4x8xf32>
    %c2_81 = arith.constant 2 : index
    %c0_82 = arith.constant 0 : index
    %c0_83 = arith.constant 0 : index
    %92 = vector.load %arg13[%c2_81, %c0_82, %c0_83] : memref<3x4x4xf32, #tpu.memory_space<vmem>>, vector<1x4x4xf32>
    %93 = vector.shape_cast %92 : vector<1x4x4xf32> to vector<4x4xf32>
    %94 = vector.extract_strided_slice %82 {offsets = [0, 16], sizes = [4, 8], strides = [1, 1]} : vector<4x24xf32> to vector<4x8xf32>
    %cst_84 = arith.constant dense<0.000000e+00> : vector<4x8xf32>
    %95 = tpu.matmul %93, %94, %cst_84 {dimension_numbers = #tpu.dot_dimension_numbers<[1], [0], [0], [1], [0, 0, 1, 1], [], []>} : vector<4x4xf32>, vector<4x8xf32>, vector<4x8xf32> -> vector<4x8xf32>
    %96 = arith.addf %91, %95 : vector<4x8xf32>
    %c4_85 = arith.constant 4 : index
    %c0_86 = arith.constant 0 : index
    %97 = vector.load %arg10[%c4_85, %c0_86] : memref<8x64xf32, #tpu.memory_space<vmem>>, vector<1x8xf32>
    %98 = vector.broadcast %97 : vector<1x8xf32> to vector<4x8xf32>
    %99 = arith.addf %96, %98 : vector<4x8xf32>
    %c0_87 = arith.constant 0 : index
    %c0_88 = arith.constant 0 : index
    %100 = vector.load %arg8[%c0_87, %c0_88] : memref<64x64xf32, #tpu.memory_space<vmem>>, vector<64x64xf32>
    %cst_89 = arith.constant dense<0.000000e+00> : vector<32x64xf32>
    %101 = tpu.matmul %0, %100, %cst_89 {dimension_numbers = #tpu.dot_dimension_numbers<[1], [0], [0], [1], [0, 0, 1, 1], [], []>} : vector<32x64xf32>, vector<64x64xf32>, vector<32x64xf32> -> vector<32x64xf32>
    %c6_90 = arith.constant 6 : index
    %c0_91 = arith.constant 0 : index
    %102 = vector.load %arg10[%c6_90, %c0_91] : memref<8x64xf32, #tpu.memory_space<vmem>>, vector<1x64xf32>
    %103 = vector.broadcast %102 : vector<1x64xf32> to vector<32x64xf32>
    %104 = arith.addf %101, %103 : vector<32x64xf32>
    %c0_92 = arith.constant 0 : index
    %c0_93 = arith.constant 0 : index
    %105 = vector.load %arg3[%c0_92, %c0_93] : memref<32x224xf32, #tpu.memory_space<vmem>>, vector<32x224xf32>
    %cst_94 = arith.constant dense<0.000000e+00> : vector<16x224xf32>
    %106 = tpu.matmul %43, %105, %cst_94 {dimension_numbers = #tpu.dot_dimension_numbers<[1], [0], [0], [1], [0, 0, 1, 1], [], []>} : vector<16x32xf32>, vector<32x224xf32>, vector<16x224xf32> -> vector<16x224xf32>
    %c0_95 = arith.constant 0 : index
    %c0_96 = arith.constant 0 : index
    %c0_97 = arith.constant 0 : index
    %107 = vector.load %arg11[%c0_95, %c0_96, %c0_97] : memref<7x16x16xf32, #tpu.memory_space<vmem>>, vector<1x16x16xf32>
    %108 = vector.shape_cast %107 : vector<1x16x16xf32> to vector<16x16xf32>
    %109 = vector.extract_strided_slice %106 {offsets = [0, 0], sizes = [16, 32], strides = [1, 1]} : vector<16x224xf32> to vector<16x32xf32>
    %cst_98 = arith.constant dense<0.000000e+00> : vector<16x32xf32>
    %110 = tpu.matmul %108, %109, %cst_98 {dimension_numbers = #tpu.dot_dimension_numbers<[1], [0], [0], [1], [0, 0, 1, 1], [], []>} : vector<16x16xf32>, vector<16x32xf32>, vector<16x32xf32> -> vector<16x32xf32>
    %c1_99 = arith.constant 1 : index
    %c0_100 = arith.constant 0 : index
    %c0_101 = arith.constant 0 : index
    %111 = vector.load %arg11[%c1_99, %c0_100, %c0_101] : memref<7x16x16xf32, #tpu.memory_space<vmem>>, vector<1x16x16xf32>
    %112 = vector.shape_cast %111 : vector<1x16x16xf32> to vector<16x16xf32>
    %113 = vector.extract_strided_slice %106 {offsets = [0, 32], sizes = [16, 32], strides = [1, 1]} : vector<16x224xf32> to vector<16x32xf32>
    %cst_102 = arith.constant dense<0.000000e+00> : vector<16x32xf32>
    %114 = tpu.matmul %112, %113, %cst_102 {dimension_numbers = #tpu.dot_dimension_numbers<[1], [0], [0], [1], [0, 0, 1, 1], [], []>} : vector<16x16xf32>, vector<16x32xf32>, vector<16x32xf32> -> vector<16x32xf32>
    %115 = arith.addf %110, %114 : vector<16x32xf32>
    %c2_103 = arith.constant 2 : index
    %c0_104 = arith.constant 0 : index
    %c0_105 = arith.constant 0 : index
    %116 = vector.load %arg11[%c2_103, %c0_104, %c0_105] : memref<7x16x16xf32, #tpu.memory_space<vmem>>, vector<1x16x16xf32>
    %117 = vector.shape_cast %116 : vector<1x16x16xf32> to vector<16x16xf32>
    %118 = vector.extract_strided_slice %106 {offsets = [0, 64], sizes = [16, 32], strides = [1, 1]} : vector<16x224xf32> to vector<16x32xf32>
    %cst_106 = arith.constant dense<0.000000e+00> : vector<16x32xf32>
    %119 = tpu.matmul %117, %118, %cst_106 {dimension_numbers = #tpu.dot_dimension_numbers<[1], [0], [0], [1], [0, 0, 1, 1], [], []>} : vector<16x16xf32>, vector<16x32xf32>, vector<16x32xf32> -> vector<16x32xf32>
    %120 = arith.addf %115, %119 : vector<16x32xf32>
    %c3_107 = arith.constant 3 : index
    %c0_108 = arith.constant 0 : index
    %c0_109 = arith.constant 0 : index
    %121 = vector.load %arg11[%c3_107, %c0_108, %c0_109] : memref<7x16x16xf32, #tpu.memory_space<vmem>>, vector<1x16x16xf32>
    %122 = vector.shape_cast %121 : vector<1x16x16xf32> to vector<16x16xf32>
    %123 = vector.extract_strided_slice %106 {offsets = [0, 96], sizes = [16, 32], strides = [1, 1]} : vector<16x224xf32> to vector<16x32xf32>
    %cst_110 = arith.constant dense<0.000000e+00> : vector<16x32xf32>
    %124 = tpu.matmul %122, %123, %cst_110 {dimension_numbers = #tpu.dot_dimension_numbers<[1], [0], [0], [1], [0, 0, 1, 1], [], []>} : vector<16x16xf32>, vector<16x32xf32>, vector<16x32xf32> -> vector<16x32xf32>
    %125 = arith.addf %120, %124 : vector<16x32xf32>
    %c4_111 = arith.constant 4 : index
    %c0_112 = arith.constant 0 : index
    %c0_113 = arith.constant 0 : index
    %126 = vector.load %arg11[%c4_111, %c0_112, %c0_113] : memref<7x16x16xf32, #tpu.memory_space<vmem>>, vector<1x16x16xf32>
    %127 = vector.shape_cast %126 : vector<1x16x16xf32> to vector<16x16xf32>
    %128 = vector.extract_strided_slice %106 {offsets = [0, 128], sizes = [16, 32], strides = [1, 1]} : vector<16x224xf32> to vector<16x32xf32>
    %cst_114 = arith.constant dense<0.000000e+00> : vector<16x32xf32>
    %129 = tpu.matmul %127, %128, %cst_114 {dimension_numbers = #tpu.dot_dimension_numbers<[1], [0], [0], [1], [0, 0, 1, 1], [], []>} : vector<16x16xf32>, vector<16x32xf32>, vector<16x32xf32> -> vector<16x32xf32>
    %130 = arith.addf %125, %129 : vector<16x32xf32>
    %c5_115 = arith.constant 5 : index
    %c0_116 = arith.constant 0 : index
    %c0_117 = arith.constant 0 : index
    %131 = vector.load %arg11[%c5_115, %c0_116, %c0_117] : memref<7x16x16xf32, #tpu.memory_space<vmem>>, vector<1x16x16xf32>
    %132 = vector.shape_cast %131 : vector<1x16x16xf32> to vector<16x16xf32>
    %133 = vector.extract_strided_slice %106 {offsets = [0, 160], sizes = [16, 32], strides = [1, 1]} : vector<16x224xf32> to vector<16x32xf32>
    %cst_118 = arith.constant dense<0.000000e+00> : vector<16x32xf32>
    %134 = tpu.matmul %132, %133, %cst_118 {dimension_numbers = #tpu.dot_dimension_numbers<[1], [0], [0], [1], [0, 0, 1, 1], [], []>} : vector<16x16xf32>, vector<16x32xf32>, vector<16x32xf32> -> vector<16x32xf32>
    %135 = arith.addf %130, %134 : vector<16x32xf32>
    %c6_119 = arith.constant 6 : index
    %c0_120 = arith.constant 0 : index
    %c0_121 = arith.constant 0 : index
    %136 = vector.load %arg11[%c6_119, %c0_120, %c0_121] : memref<7x16x16xf32, #tpu.memory_space<vmem>>, vector<1x16x16xf32>
    %137 = vector.shape_cast %136 : vector<1x16x16xf32> to vector<16x16xf32>
    %138 = vector.extract_strided_slice %106 {offsets = [0, 192], sizes = [16, 32], strides = [1, 1]} : vector<16x224xf32> to vector<16x32xf32>
    %cst_122 = arith.constant dense<0.000000e+00> : vector<16x32xf32>
    %139 = tpu.matmul %137, %138, %cst_122 {dimension_numbers = #tpu.dot_dimension_numbers<[1], [0], [0], [1], [0, 0, 1, 1], [], []>} : vector<16x16xf32>, vector<16x32xf32>, vector<16x32xf32> -> vector<16x32xf32>
    %140 = arith.addf %135, %139 : vector<16x32xf32>
    %c1_123 = arith.constant 1 : index
    %c0_124 = arith.constant 0 : index
    %141 = vector.load %arg10[%c1_123, %c0_124] : memref<8x64xf32, #tpu.memory_space<vmem>>, vector<1x32xf32>
    %142 = vector.broadcast %141 : vector<1x32xf32> to vector<16x32xf32>
    %143 = arith.addf %140, %142 : vector<16x32xf32>
    %c0_125 = arith.constant 0 : index
    %c0_126 = arith.constant 0 : index
    %144 = vector.load %arg5[%c0_125, %c0_126] : memref<16x80xf32, #tpu.memory_space<vmem>>, vector<16x80xf32>
    %cst_127 = arith.constant dense<0.000000e+00> : vector<8x80xf32>
    %145 = tpu.matmul %76, %144, %cst_127 {dimension_numbers = #tpu.dot_dimension_numbers<[1], [0], [0], [1], [0, 0, 1, 1], [], []>} : vector<8x16xf32>, vector<16x80xf32>, vector<8x80xf32> -> vector<8x80xf32>
    %c0_128 = arith.constant 0 : index
    %c0_129 = arith.constant 0 : index
    %c0_130 = arith.constant 0 : index
    %146 = vector.load %arg12[%c0_128, %c0_129, %c0_130] : memref<5x8x8xf32, #tpu.memory_space<vmem>>, vector<1x8x8xf32>
    %147 = vector.shape_cast %146 : vector<1x8x8xf32> to vector<8x8xf32>
    %148 = vector.extract_strided_slice %145 {offsets = [0, 0], sizes = [8, 16], strides = [1, 1]} : vector<8x80xf32> to vector<8x16xf32>
    %cst_131 = arith.constant dense<0.000000e+00> : vector<8x16xf32>
    %149 = tpu.matmul %147, %148, %cst_131 {dimension_numbers = #tpu.dot_dimension_numbers<[1], [0], [0], [1], [0, 0, 1, 1], [], []>} : vector<8x8xf32>, vector<8x16xf32>, vector<8x16xf32> -> vector<8x16xf32>
    %c1_132 = arith.constant 1 : index
    %c0_133 = arith.constant 0 : index
    %c0_134 = arith.constant 0 : index
    %150 = vector.load %arg12[%c1_132, %c0_133, %c0_134] : memref<5x8x8xf32, #tpu.memory_space<vmem>>, vector<1x8x8xf32>
    %151 = vector.shape_cast %150 : vector<1x8x8xf32> to vector<8x8xf32>
    %152 = vector.extract_strided_slice %145 {offsets = [0, 16], sizes = [8, 16], strides = [1, 1]} : vector<8x80xf32> to vector<8x16xf32>
    %cst_135 = arith.constant dense<0.000000e+00> : vector<8x16xf32>
    %153 = tpu.matmul %151, %152, %cst_135 {dimension_numbers = #tpu.dot_dimension_numbers<[1], [0], [0], [1], [0, 0, 1, 1], [], []>} : vector<8x8xf32>, vector<8x16xf32>, vector<8x16xf32> -> vector<8x16xf32>
    %154 = arith.addf %149, %153 : vector<8x16xf32>
    %c2_136 = arith.constant 2 : index
    %c0_137 = arith.constant 0 : index
    %c0_138 = arith.constant 0 : index
    %155 = vector.load %arg12[%c2_136, %c0_137, %c0_138] : memref<5x8x8xf32, #tpu.memory_space<vmem>>, vector<1x8x8xf32>
    %156 = vector.shape_cast %155 : vector<1x8x8xf32> to vector<8x8xf32>
    %157 = vector.extract_strided_slice %145 {offsets = [0, 32], sizes = [8, 16], strides = [1, 1]} : vector<8x80xf32> to vector<8x16xf32>
    %cst_139 = arith.constant dense<0.000000e+00> : vector<8x16xf32>
    %158 = tpu.matmul %156, %157, %cst_139 {dimension_numbers = #tpu.dot_dimension_numbers<[1], [0], [0], [1], [0, 0, 1, 1], [], []>} : vector<8x8xf32>, vector<8x16xf32>, vector<8x16xf32> -> vector<8x16xf32>
    %159 = arith.addf %154, %158 : vector<8x16xf32>
    %c3_140 = arith.constant 3 : index
    %c0_141 = arith.constant 0 : index
    %c0_142 = arith.constant 0 : index
    %160 = vector.load %arg12[%c3_140, %c0_141, %c0_142] : memref<5x8x8xf32, #tpu.memory_space<vmem>>, vector<1x8x8xf32>
    %161 = vector.shape_cast %160 : vector<1x8x8xf32> to vector<8x8xf32>
    %162 = vector.extract_strided_slice %145 {offsets = [0, 48], sizes = [8, 16], strides = [1, 1]} : vector<8x80xf32> to vector<8x16xf32>
    %cst_143 = arith.constant dense<0.000000e+00> : vector<8x16xf32>
    %163 = tpu.matmul %161, %162, %cst_143 {dimension_numbers = #tpu.dot_dimension_numbers<[1], [0], [0], [1], [0, 0, 1, 1], [], []>} : vector<8x8xf32>, vector<8x16xf32>, vector<8x16xf32> -> vector<8x16xf32>
    %164 = arith.addf %159, %163 : vector<8x16xf32>
    %c4_144 = arith.constant 4 : index
    %c0_145 = arith.constant 0 : index
    %c0_146 = arith.constant 0 : index
    %165 = vector.load %arg12[%c4_144, %c0_145, %c0_146] : memref<5x8x8xf32, #tpu.memory_space<vmem>>, vector<1x8x8xf32>
    %166 = vector.shape_cast %165 : vector<1x8x8xf32> to vector<8x8xf32>
    %167 = vector.extract_strided_slice %145 {offsets = [0, 64], sizes = [8, 16], strides = [1, 1]} : vector<8x80xf32> to vector<8x16xf32>
    %cst_147 = arith.constant dense<0.000000e+00> : vector<8x16xf32>
    %168 = tpu.matmul %166, %167, %cst_147 {dimension_numbers = #tpu.dot_dimension_numbers<[1], [0], [0], [1], [0, 0, 1, 1], [], []>} : vector<8x8xf32>, vector<8x16xf32>, vector<8x16xf32> -> vector<8x16xf32>
    %169 = arith.addf %164, %168 : vector<8x16xf32>
    %c3_148 = arith.constant 3 : index
    %c0_149 = arith.constant 0 : index
    %170 = vector.load %arg10[%c3_148, %c0_149] : memref<8x64xf32, #tpu.memory_space<vmem>>, vector<1x16xf32>
    %171 = vector.broadcast %170 : vector<1x16xf32> to vector<8x16xf32>
    %172 = arith.addf %169, %171 : vector<8x16xf32>
    %c0_150 = arith.constant 0 : index
    %c0_151 = arith.constant 0 : index
    %173 = vector.load %arg7[%c0_150, %c0_151] : memref<8x24xf32, #tpu.memory_space<vmem>>, vector<8x24xf32>
    %cst_152 = arith.constant dense<0.000000e+00> : vector<4x24xf32>
    %174 = tpu.matmul %99, %173, %cst_152 {dimension_numbers = #tpu.dot_dimension_numbers<[1], [0], [0], [1], [0, 0, 1, 1], [], []>} : vector<4x8xf32>, vector<8x24xf32>, vector<4x24xf32> -> vector<4x24xf32>
    %c0_153 = arith.constant 0 : index
    %c0_154 = arith.constant 0 : index
    %c0_155 = arith.constant 0 : index
    %175 = vector.load %arg13[%c0_153, %c0_154, %c0_155] : memref<3x4x4xf32, #tpu.memory_space<vmem>>, vector<1x4x4xf32>
    %176 = vector.shape_cast %175 : vector<1x4x4xf32> to vector<4x4xf32>
    %177 = vector.extract_strided_slice %174 {offsets = [0, 0], sizes = [4, 8], strides = [1, 1]} : vector<4x24xf32> to vector<4x8xf32>
    %cst_156 = arith.constant dense<0.000000e+00> : vector<4x8xf32>
    %178 = tpu.matmul %176, %177, %cst_156 {dimension_numbers = #tpu.dot_dimension_numbers<[1], [0], [0], [1], [0, 0, 1, 1], [], []>} : vector<4x4xf32>, vector<4x8xf32>, vector<4x8xf32> -> vector<4x8xf32>
    %c1_157 = arith.constant 1 : index
    %c0_158 = arith.constant 0 : index
    %c0_159 = arith.constant 0 : index
    %179 = vector.load %arg13[%c1_157, %c0_158, %c0_159] : memref<3x4x4xf32, #tpu.memory_space<vmem>>, vector<1x4x4xf32>
    %180 = vector.shape_cast %179 : vector<1x4x4xf32> to vector<4x4xf32>
    %181 = vector.extract_strided_slice %174 {offsets = [0, 8], sizes = [4, 8], strides = [1, 1]} : vector<4x24xf32> to vector<4x8xf32>
    %cst_160 = arith.constant dense<0.000000e+00> : vector<4x8xf32>
    %182 = tpu.matmul %180, %181, %cst_160 {dimension_numbers = #tpu.dot_dimension_numbers<[1], [0], [0], [1], [0, 0, 1, 1], [], []>} : vector<4x4xf32>, vector<4x8xf32>, vector<4x8xf32> -> vector<4x8xf32>
    %183 = arith.addf %178, %182 : vector<4x8xf32>
    %c2_161 = arith.constant 2 : index
    %c0_162 = arith.constant 0 : index
    %c0_163 = arith.constant 0 : index
    %184 = vector.load %arg13[%c2_161, %c0_162, %c0_163] : memref<3x4x4xf32, #tpu.memory_space<vmem>>, vector<1x4x4xf32>
    %185 = vector.shape_cast %184 : vector<1x4x4xf32> to vector<4x4xf32>
    %186 = vector.extract_strided_slice %174 {offsets = [0, 16], sizes = [4, 8], strides = [1, 1]} : vector<4x24xf32> to vector<4x8xf32>
    %cst_164 = arith.constant dense<0.000000e+00> : vector<4x8xf32>
    %187 = tpu.matmul %185, %186, %cst_164 {dimension_numbers = #tpu.dot_dimension_numbers<[1], [0], [0], [1], [0, 0, 1, 1], [], []>} : vector<4x4xf32>, vector<4x8xf32>, vector<4x8xf32> -> vector<4x8xf32>
    %188 = arith.addf %183, %187 : vector<4x8xf32>
    %c5_165 = arith.constant 5 : index
    %c0_166 = arith.constant 0 : index
    %189 = vector.load %arg10[%c5_165, %c0_166] : memref<8x64xf32, #tpu.memory_space<vmem>>, vector<1x8xf32>
    %190 = vector.broadcast %189 : vector<1x8xf32> to vector<4x8xf32>
    %191 = arith.addf %188, %190 : vector<4x8xf32>
    %c0_167 = arith.constant 0 : index
    %c0_168 = arith.constant 0 : index
    %192 = vector.load %arg20[%c0_167, %c0_168] : memref<8x4xf32, #tpu.memory_space<vmem>>, vector<8x4xf32>
    %cst_169 = arith.constant dense<0.000000e+00> : vector<8x8xf32>
    %193 = tpu.matmul %192, %191, %cst_169 {dimension_numbers = #tpu.dot_dimension_numbers<[1], [0], [0], [1], [0, 0, 1, 1], [], []>} : vector<8x4xf32>, vector<4x8xf32>, vector<8x8xf32> -> vector<8x8xf32>
    %c0_170 = arith.constant 0 : index
    %c0_171 = arith.constant 0 : index
    %194 = vector.load %arg21[%c0_170, %c0_171] : memref<8x16xf32, #tpu.memory_space<vmem>>, vector<8x16xf32>
    %cst_172 = arith.constant dense<0.000000e+00> : vector<8x16xf32>
    %195 = tpu.matmul %193, %194, %cst_172 {dimension_numbers = #tpu.dot_dimension_numbers<[1], [0], [0], [1], [0, 0, 1, 1], [], []>} : vector<8x8xf32>, vector<8x16xf32>, vector<8x16xf32> -> vector<8x16xf32>
    %196 = arith.addf %195, %172 : vector<8x16xf32>
    %c0_173 = arith.constant 0 : index
    %c0_174 = arith.constant 0 : index
    %197 = vector.load %arg22[%c0_173, %c0_174] : memref<16x8xf32, #tpu.memory_space<vmem>>, vector<16x8xf32>
    %cst_175 = arith.constant dense<0.000000e+00> : vector<16x16xf32>
    %198 = tpu.matmul %197, %196, %cst_175 {dimension_numbers = #tpu.dot_dimension_numbers<[1], [0], [0], [1], [0, 0, 1, 1], [], []>} : vector<16x8xf32>, vector<8x16xf32>, vector<16x16xf32> -> vector<16x16xf32>
    %c0_176 = arith.constant 0 : index
    %c0_177 = arith.constant 0 : index
    %199 = vector.load %arg23[%c0_176, %c0_177] : memref<16x32xf32, #tpu.memory_space<vmem>>, vector<16x32xf32>
    %cst_178 = arith.constant dense<0.000000e+00> : vector<16x32xf32>
    %200 = tpu.matmul %198, %199, %cst_178 {dimension_numbers = #tpu.dot_dimension_numbers<[1], [0], [0], [1], [0, 0, 1, 1], [], []>} : vector<16x16xf32>, vector<16x32xf32>, vector<16x32xf32> -> vector<16x32xf32>
    %201 = arith.addf %200, %143 : vector<16x32xf32>
    %c0_179 = arith.constant 0 : index
    %c0_180 = arith.constant 0 : index
    %202 = vector.load %arg26[%c0_179, %c0_180] : memref<32x32xf32, #tpu.memory_space<vmem>>, vector<32x32xf32>
    %c0_181 = arith.constant 0 : index
    %c0_182 = arith.constant 0 : index
    %203 = vector.load %arg9[%c0_181, %c0_182] : memref<64x64xf32, #tpu.memory_space<vmem>>, vector<64x64xf32>
    %cst_183 = arith.constant dense<0.000000e+00> : vector<32x64xf32>
    %204 = tpu.matmul %0, %203, %cst_183 {dimension_numbers = #tpu.dot_dimension_numbers<[1], [0], [0], [1], [0, 0, 1, 1], [], []>} : vector<32x64xf32>, vector<64x64xf32>, vector<32x64xf32> -> vector<32x64xf32>
    %cst_184 = arith.constant dense<0.000000e+00> : vector<32x64xf32>
    %205 = tpu.matmul %202, %204, %cst_184 {dimension_numbers = #tpu.dot_dimension_numbers<[1], [0], [0], [1], [0, 0, 1, 1], [], []>} : vector<32x32xf32>, vector<32x64xf32>, vector<32x64xf32> -> vector<32x64xf32>
    %c7 = arith.constant 7 : index
    %c0_185 = arith.constant 0 : index
    %206 = vector.load %arg10[%c7, %c0_185] : memref<8x64xf32, #tpu.memory_space<vmem>>, vector<1x64xf32>
    %207 = vector.broadcast %206 : vector<1x64xf32> to vector<32x64xf32>
    %208 = arith.addf %205, %207 : vector<32x64xf32>
    %c0_186 = arith.constant 0 : index
    %c0_187 = arith.constant 0 : index
    %209 = vector.load %arg24[%c0_186, %c0_187] : memref<32x16xf32, #tpu.memory_space<vmem>>, vector<32x16xf32>
    %cst_188 = arith.constant dense<0.000000e+00> : vector<32x32xf32>
    %210 = tpu.matmul %209, %201, %cst_188 {dimension_numbers = #tpu.dot_dimension_numbers<[1], [0], [0], [1], [0, 0, 1, 1], [], []>} : vector<32x16xf32>, vector<16x32xf32>, vector<32x32xf32> -> vector<32x32xf32>
    %c0_189 = arith.constant 0 : index
    %c0_190 = arith.constant 0 : index
    %211 = vector.load %arg25[%c0_189, %c0_190] : memref<32x64xf32, #tpu.memory_space<vmem>>, vector<32x64xf32>
    %cst_191 = arith.constant dense<0.000000e+00> : vector<32x64xf32>
    %212 = tpu.matmul %210, %211, %cst_191 {dimension_numbers = #tpu.dot_dimension_numbers<[1], [0], [0], [1], [0, 0, 1, 1], [], []>} : vector<32x32xf32>, vector<32x64xf32>, vector<32x64xf32> -> vector<32x64xf32>
    %213 = arith.mulf %212, %104 : vector<32x64xf32>
    %214 = arith.addf %213, %208 : vector<32x64xf32>
    %c0_192 = arith.constant 0 : index
    %c0_193 = arith.constant 0 : index
    %215 = vector.load %arg27[%c0_192, %c0_193] : memref<32x64xf32, #tpu.memory_space<vmem>>, vector<32x64xf32>
    tpu.vector_store %arg27[%c0_192, %c0_193], %214 {strides = array<i32>} : memref<32x64xf32, #tpu.memory_space<vmem>>, vector<32x64xf32>,
    return
  }
  func.func @transform_0(%arg0: i32) -> (i32, i32) {
    %c0_i32 = arith.constant 0 : i32
    %c0_i32_0 = arith.constant 0 : i32
    return %arg0, %c0_i32 : i32, i32
  }
  func.func @transform_1(%arg0: i32) -> (i32, i32) {
    %c0_i32 = arith.constant 0 : i32
    %c0_i32_0 = arith.constant 0 : i32
    %c0_i32_1 = arith.constant 0 : i32
    return %c0_i32, %c0_i32_0 : i32, i32
  }
  func.func @transform_2(%arg0: i32) -> (i32, i32) {
    %c0_i32 = arith.constant 0 : i32
    %c0_i32_0 = arith.constant 0 : i32
    %c0_i32_1 = arith.constant 0 : i32
    return %c0_i32, %c0_i32_0 : i32, i32
  }
  func.func @transform_3(%arg0: i32) -> (i32, i32) {
    %c0_i32 = arith.constant 0 : i32
    %c0_i32_0 = arith.constant 0 : i32
    %c0_i32_1 = arith.constant 0 : i32
    return %c0_i32, %c0_i32_0 : i32, i32
  }
  func.func @transform_4(%arg0: i32) -> (i32, i32) {
    %c0_i32 = arith.constant 0 : i32
    %c0_i32_0 = arith.constant 0 : i32
    %c0_i32_1 = arith.constant 0 : i32
    return %c0_i32, %c0_i32_0 : i32, i32
  }
  func.func @transform_5(%arg0: i32) -> (i32, i32) {
    %c0_i32 = arith.constant 0 : i32
    %c0_i32_0 = arith.constant 0 : i32
    %c0_i32_1 = arith.constant 0 : i32
    return %c0_i32, %c0_i32_0 : i32, i32
  }
  func.func @transform_6(%arg0: i32) -> (i32, i32) {
    %c0_i32 = arith.constant 0 : i32
    %c0_i32_0 = arith.constant 0 : i32
    %c0_i32_1 = arith.constant 0 : i32
    return %c0_i32, %c0_i32_0 : i32, i32
  }
  func.func @transform_7(%arg0: i32) -> (i32, i32) {
    %c0_i32 = arith.constant 0 : i32
    %c0_i32_0 = arith.constant 0 : i32
    %c0_i32_1 = arith.constant 0 : i32
    return %c0_i32, %c0_i32_0 : i32, i32
  }
  func.func @transform_8(%arg0: i32) -> (i32, i32) {
    %c0_i32 = arith.constant 0 : i32
    %c0_i32_0 = arith.constant 0 : i32
    %c0_i32_1 = arith.constant 0 : i32
    return %c0_i32, %c0_i32_0 : i32, i32
  }
  func.func @transform_9(%arg0: i32) -> (i32, i32) {
    %c0_i32 = arith.constant 0 : i32
    %c0_i32_0 = arith.constant 0 : i32
    %c0_i32_1 = arith.constant 0 : i32
    return %c0_i32, %c0_i32_0 : i32, i32
  }
  func.func @transform_10(%arg0: i32) -> (i32, i32, i32) {
    %c0_i32 = arith.constant 0 : i32
    %c0_i32_0 = arith.constant 0 : i32
    %c0_i32_1 = arith.constant 0 : i32
    %c0_i32_2 = arith.constant 0 : i32
    return %c0_i32, %c0_i32_0, %c0_i32_1 : i32, i32, i32
  }
  func.func @transform_11(%arg0: i32) -> (i32, i32, i32) {
    %c0_i32 = arith.constant 0 : i32
    %c0_i32_0 = arith.constant 0 : i32
    %c0_i32_1 = arith.constant 0 : i32
    %c0_i32_2 = arith.constant 0 : i32
    return %c0_i32, %c0_i32_0, %c0_i32_1 : i32, i32, i32
  }
  func.func @transform_12(%arg0: i32) -> (i32, i32, i32) {
    %c0_i32 = arith.constant 0 : i32
    %c0_i32_0 = arith.constant 0 : i32
    %c0_i32_1 = arith.constant 0 : i32
    %c0_i32_2 = arith.constant 0 : i32
    return %c0_i32, %c0_i32_0, %c0_i32_1 : i32, i32, i32
  }
  func.func @transform_13(%arg0: i32) -> (i32, i32) {
    %c0_i32 = arith.constant 0 : i32
    %c0_i32_0 = arith.constant 0 : i32
    %c0_i32_1 = arith.constant 0 : i32
    return %c0_i32, %c0_i32_0 : i32, i32
  }
  func.func @transform_14(%arg0: i32) -> (i32, i32) {
    %c0_i32 = arith.constant 0 : i32
    %c0_i32_0 = arith.constant 0 : i32
    %c0_i32_1 = arith.constant 0 : i32
    return %c0_i32, %c0_i32_0 : i32, i32
  }
  func.func @transform_15(%arg0: i32) -> (i32, i32) {
    %c0_i32 = arith.constant 0 : i32
    %c0_i32_0 = arith.constant 0 : i32
    %c0_i32_1 = arith.constant 0 : i32
    return %c0_i32, %c0_i32_0 : i32, i32
  }
  func.func @transform_16(%arg0: i32) -> (i32, i32) {
    %c0_i32 = arith.constant 0 : i32
    %c0_i32_0 = arith.constant 0 : i32
    %c0_i32_1 = arith.constant 0 : i32
    return %c0_i32, %c0_i32_0 : i32, i32
  }
  func.func @transform_17(%arg0: i32) -> (i32, i32) {
    %c0_i32 = arith.constant 0 : i32
    %c0_i32_0 = arith.constant 0 : i32
    %c0_i32_1 = arith.constant 0 : i32
    return %c0_i32, %c0_i32_0 : i32, i32
  }
  func.func @transform_18(%arg0: i32) -> (i32, i32) {
    %c0_i32 = arith.constant 0 : i32
    %c0_i32_0 = arith.constant 0 : i32
    %c0_i32_1 = arith.constant 0 : i32
    return %c0_i32, %c0_i32_0 : i32, i32
  }
  func.func @transform_19(%arg0: i32) -> (i32, i32) {
    %c0_i32 = arith.constant 0 : i32
    %c0_i32_0 = arith.constant 0 : i32
    %c0_i32_1 = arith.constant 0 : i32
    return %c0_i32, %c0_i32_0 : i32, i32
  }
  func.func @transform_20(%arg0: i32) -> (i32, i32) {
    %c0_i32 = arith.constant 0 : i32
    %c0_i32_0 = arith.constant 0 : i32
    %c0_i32_1 = arith.constant 0 : i32
    return %c0_i32, %c0_i32_0 : i32, i32
  }
  func.func @transform_21(%arg0: i32) -> (i32, i32) {
    %c0_i32 = arith.constant 0 : i32
    %c0_i32_0 = arith.constant 0 : i32
    %c0_i32_1 = arith.constant 0 : i32
    return %c0_i32, %c0_i32_0 : i32, i32
  }
  func.func @transform_22(%arg0: i32) -> (i32, i32) {
    %c0_i32 = arith.constant 0 : i32
    %c0_i32_0 = arith.constant 0 : i32
    %c0_i32_1 = arith.constant 0 : i32
    return %c0_i32, %c0_i32_0 : i32, i32
  }
  func.func @transform_23(%arg0: i32) -> (i32, i32) {
    %c0_i32 = arith.constant 0 : i32
    %c0_i32_0 = arith.constant 0 : i32
    %c0_i32_1 = arith.constant 0 : i32
    return %c0_i32, %c0_i32_0 : i32, i32
  }
  func.func @transform_24(%arg0: i32) -> (i32, i32) {
    %c0_i32 = arith.constant 0 : i32
    %c0_i32_0 = arith.constant 0 : i32
    %c0_i32_1 = arith.constant 0 : i32
    return %c0_i32, %c0_i32_0 : i32, i32
  }
  func.func @transform_25(%arg0: i32) -> (i32, i32) {
    %c0_i32 = arith.constant 0 : i32
    %c0_i32_0 = arith.constant 0 : i32
    %c0_i32_1 = arith.constant 0 : i32
    return %c0_i32, %c0_i32_0 : i32, i32
  }
  func.func @transform_26(%arg0: i32) -> (i32, i32) {
    %c0_i32 = arith.constant 0 : i32
    %c0_i32_0 = arith.constant 0 : i32
    return %arg0, %c0_i32 : i32, i32
  }
}

</mosaic_0001>

<bundles_post_ra>
// kernel: tile.53
= control target key start
LH: loop header
LB: loop body
LE: loop exit
PB: predicated region body
PF: predicated region fallthrough
CT: control target
= control target key end

     0   :  { %s22_s0 = inlined_call_operand.vmem [shape: f32[4], index: 0, kind: input, shape index: {}]   ;;  %s23_s1 = inlined_call_operand.vmem [shape: f32[8,4], index: 1, kind: output, shape index: {}]  }
   0x1   :  { %v4_v0 = vld [vmem:[%s22_s0] ss:$0 sm:$0xff] }
   0x2   :  { %5 = vst [vmem:[%s23_s1] sm:$0xff] %v4_v0 }

// kernel: tile.63
= control target key start
LH: loop header
LB: loop body
LE: loop exit
PB: predicated region body
PF: predicated region fallthrough
CT: control target
= control target key end

     0   :  { %s22_s0 = inlined_call_operand.vmem [shape: f32[4], index: 0, kind: input, shape index: {}]   ;;  %s23_s1 = inlined_call_operand.vmem [shape: f32[4,4], index: 1, kind: output, shape index: {}]  }
   0x1   :  { %v4_v0 = vld [vmem:[%s22_s0] ss:$0 sm:$0xff] }
   0x2   :  { %5 = vst [vmem:[%s23_s1] sm:$0xf] %v4_v0 }

// kernel: tile.73
= control target key start
LH: loop header
LB: loop body
LE: loop exit
PB: predicated region body
PF: predicated region fallthrough
CT: control target
= control target key end

     0   :  { %s22_s0 = inlined_call_operand.vmem [shape: f32[4], index: 0, kind: input, shape index: {}]   ;;  %s23_s1 = inlined_call_operand.vmem [shape: f32[2,4], index: 1, kind: output, shape index: {}]  }
   0x1   :  { %v4_v0 = vld [vmem:[%s22_s0] ss:$0 sm:$0xff] }
   0x2   :  { %5 = vst [vmem:[%s23_s1] sm:$0x3] %v4_v0 }

// kernel: tile.83
= control target key start
LH: loop header
LB: loop body
LE: loop exit
PB: predicated region body
PF: predicated region fallthrough
CT: control target
= control target key end

     0   :  { %s28_s0 = inlined_call_operand.vmem [shape: f32[4], index: 0, kind: input, shape index: {}]   ;;  %s29_s1 = inlined_call_operand.vmem [shape: f32[16,4], index: 1, kind: output, shape index: {}]  }
   0x1   :  { %v4_v0 = vld [vmem:[%s28_s0] ss:$0 sm:$0xff] }
   0x2   :  { %5 = vst [vmem:[%s29_s1] sm:$0xff] %v4_v0  ;;  %8 = vst [vmem:[%s29_s1 + $0x8] sm:$0xff] %v4_v0 }

// kernel: feature_pyramid_attention.1
= control target key start
LH: loop header
LB: loop body
LE: loop exit
PB: predicated region body
PF: predicated region fallthrough
CT: control target
= control target key end

     0   :  { %vm89_vm0 = vcmask 261120   ;;  %vm179_vm1 = vcmask 523264   ;;  %v5281_v34 = vmov 0.0   ;;  %vm365_vm2 = vcmask 130048   ;;  %s5288_s29 = smov 80   ;;  %s6100_s0 = inlined_call_operand.vmem [shape: f32[32,64], index: 0, kind: input, shape index: {}]   ;;  %s6101_s13 = inlined_call_operand.vmem [shape: f32[16,32], index: 13, kind: input, shape index: {}]   ;;  %s6102_s14 = inlined_call_operand.vmem [shape: f32[64,32], index: 14, kind: input, shape index: {}]   ;;  %s6103_s1 = inlined_call_operand.vmem [shape: f32[32,224], index: 1, kind: input, shape index: {}]   ;;  %s6104_s10 = inlined_call_operand.vmem [shape: f32[7,16,16], index: 10, kind: input, shape index: {}]   ;;  %s6105_s9 = inlined_call_operand.vmem [shape: f32[8,64], index: 9, kind: input, shape index: {}]   ;;  %s6106_s16 = inlined_call_operand.vmem [shape: f32[32,16], index: 16, kind: input, shape index: {}]   ;;  %s6107_s15 = inlined_call_operand.vmem [shape: f32[8,16], index: 15, kind: input, shape index: {}]   ;;  %s6108_s3 = inlined_call_operand.vmem [shape: f32[16,80], index: 3, kind: input, shape index: {}]   ;;  %s6109_s11 = inlined_call_operand.vmem [shape: f32[5,8,8], index: 11, kind: input, shape index: {}]   ;;  %s6110_s18 = inlined_call_operand.vmem [shape: f32[16,8], index: 18, kind: input, shape index: {}]   ;;  %s6111_s17 = inlined_call_operand.vmem [shape: f32[4,8], index: 17, kind: input, shape index: {}]   ;;  %s6112_s5 = inlined_call_operand.vmem [shape: f32[8,24], index: 5, kind: input, shape index: {}]   ;;  %s6113_s7 = inlined_call_operand.vmem [shape: f32[64,64], index: 7, kind: input, shape index: {}]   ;;  %s6114_s12 = inlined_call_operand.vmem [shape: f32[3,4,4], index: 12, kind: input, shape index: {}]   ;;  %s6115_s4 = inlined_call_operand.vmem [shape: f32[16,80], index: 4, kind: input, shape index: {}]   ;;  %s6116_s2 = inlined_call_operand.vmem [shape: f32[32,224], index: 2, kind: input, shape index: {}]   ;;  %s6117_s6 = inlined_call_operand.vmem [shape: f32[8,24], index: 6, kind: input, shape index: {}]   ;;  %s6118_s19 = inlined_call_operand.vmem [shape: f32[8,4], index: 19, kind: input, shape index: {}]   ;;  %s6119_s20 = inlined_call_operand.vmem [shape: f32[8,16], index: 20, kind: input, shape index: {}]   ;;  %s6120_s21 = inlined_call_operand.vmem [shape: f32[16,8], index: 21, kind: input, shape index: {}]   ;;  %s6121_s8 = inlined_call_operand.vmem [shape: f32[64,64], index: 8, kind: input, shape index: {}]   ;;  %s6122_s22 = inlined_call_operand.vmem [shape: f32[16,32], index: 22, kind: input, shape index: {}]   ;;  %s6123_s25 = inlined_call_operand.vmem [shape: f32[32,32], index: 25, kind: input, shape index: {}]   ;;  %s6124_s23 = inlined_call_operand.vmem [shape: f32[32,16], index: 23, kind: input, shape index: {}]   ;;  %s6125_s24 = inlined_call_operand.vmem [shape: f32[32,64], index: 24, kind: input, shape index: {}]   ;;  %s6126_s26 = inlined_call_operand.vmem [shape: f32[32,64], index: 26, kind: output, shape index: {}]  }
   0x1   :  { %6137 = sst [smem:[#allocation2_spill]] %s6100_s0  ;;  %vm5286_vm3 = vmmov 0   ;;  %vm1224_vm4 = vcmask 64512   ;;  %vm1847_vm5 = vcmask 1043456   ;;  %vm1843_vm6 = vcmask 31744  }
   0x2   :  { %6138 = sst [smem:[#allocation3_spill]] %s6101_s13 }
   0x3   :  { %6139 = sst [smem:[#allocation4_spill]] %s6102_s14  ;;  %s6149_s14 = sld [smem:[#allocation3_spill]] }
   0x4   :  { %6140 = sst [smem:[#allocation5_spill]] %s6103_s1  ;;  %s6150_s1 = sld [smem:[#allocation4_spill]] }
   0x5   :  { %6141 = sst [smem:[#allocation6_spill]] %s6104_s10  ;;  %s6151_s0 = sld [smem:[#allocation5_spill]] }
   0x6   :  { %6142 = sst [smem:[#allocation7_spill]] %s6105_s9  ;;  %s6152_s30 = sld [smem:[#allocation6_spill]] }
   0x7   :  { %6143 = sst [smem:[#allocation8_spill]] %s6106_s16  ;;  %s5282_s9 = smov 32  }
   0x8   :  { %6144 = sst [smem:[#allocation9_spill]] %s6107_s15  ;;  %s6148_s15 = sld [smem:[#allocation2_spill]] }
   0x9   :  { %6145 = sst [smem:[#allocation10_spill]] %s6108_s3  ;;  %v87_v5 = vld [vmem:[%s6149_s14] sm:$0xff]  ;;  %v88_v16 = vld [vmem:[%s6149_s14 + $0x8] sm:$0xff]  ;;  %s6154_s16 = sld [smem:[#allocation8_spill]] }
   0xa   :  { %6146 = sst [smem:[#allocation11_spill]] %s6109_s11  ;;  %4652 = vmatprep.mubr.msk.f32.mxu0 %vm89_vm0, %v87_v5  ;;  %v171_v7 = vld [vmem:[%s6150_s1] sm:$0xff]  ;;  %v172_v8 = vld [vmem:[%s6150_s1 + $0x8] sm:$0xff]  ;;  %v173_v9 = vld [vmem:[%s6150_s1 + $0x10] sm:$0xff]  ;;  %s6155_s10 = sld [smem:[#allocation9_spill]] }
   0xb   :  { %6147 = sst [smem:[#allocation12_spill]] %s6110_s18  ;;  %v5018_v10 = vpack.c.bf16 %v172_v8, %v171_v7  ;;  %v174_v11 = vld [vmem:[%s6150_s1 + $0x18] sm:$0xff]  ;;  %v175_v13 = vld [vmem:[%s6150_s1 + $0x20] sm:$0xff]  ;;  %v176_v14 = vld [vmem:[%s6150_s1 + $0x28] sm:$0xff]  ;;  %s5284_s18 = smov 64  }
   0xc   :  { %v5022_v12 = vpack.c.bf16 %v174_v11, %v173_v9  ;;  %v5026_v15 = vpack.c.bf16 %v176_v14, %v175_v13  ;;  %v177_v17 = vld [vmem:[%s6150_s1 + $0x30] sm:$0xff]  ;;  %v178_v18 = vld [vmem:[%s6150_s1 + $0x38] sm:$0xff]  ;;  %v262_v20 = vld [vmem:[%s6151_s0 + $0x8] sm:$0xff]  ;;  %s5283_s1 = smov 96   ;;  %s6156_s28 = sld [smem:[#allocation10_spill]] }
   0xd   :  { %5019 = vmatprep.subr.bf16.mxu1 %v5018_v10  ;;  %v5030_v19 = vpack.c.bf16 %v178_v18, %v177_v17  ;;  %v264_v21 = vld [vmem:[%s6151_s0 + $0x18] sm:$0xff]  ;;  %v261_v22 = vld [vmem:[%s6151_s0] sm:$0xff]  ;;  %v263_v24 = vld [vmem:[%s6151_s0 + $0x10] sm:$0xff]  ;;  %s6157_s11 = sld [smem:[#allocation11_spill]]  ;;  %s6158_s3 = sld [smem:[#allocation12_spill]] }
   0xe   :  { %v5428_v0 = vld [vmem:[%s6148_s15] sm:$0xff]  ;;  %v5433_v1 = vld [vmem:[%s6148_s15 + $0x8] sm:$0xff]  ;;  %v5438_v2 = vld [vmem:[%s6148_s15 + $0x10] sm:$0xff]  ;;  %5021 = vmatpush3.bf16.msra.mxu1 %v5018_v10  ;;  %v5034_v23 = vpack.c.bf16 %v264_v21, %v262_v20  ;;  %v5036_v27 = vpack.c.bf16 %v263_v24, %v261_v22 }
   0xf   :  { %v5010_v3 = vpack.c.bf16 %v5433_v1, %v5428_v0  ;;  %v5445_v4 = vld [vmem:[%s6148_s15 + $0x18] sm:$0xff]  ;;  %5023 = vmatprep.subr.bf16.mxu1 %v5022_v12  ;;  %v266_v25 = vld [vmem:[%s6151_s0 + $0x28] sm:$0xff]  ;;  %v265_v29 = vld [vmem:[%s6151_s0 + $0x20] sm:$0xff] }
  0x10   :  { %v5014_v6 = vpack.c.bf16 %v5445_v4, %v5438_v2  ;;  %v268_v26 = vld [vmem:[%s6151_s0 + $0x38] sm:$0xff]  ;;  %v267_v30 = vld [vmem:[%s6151_s0 + $0x30] sm:$0xff]  ;;  %v5531_v54 = vld [vmem:[%s6152_s30] sm:$0xff]  ;;  %s6153_s0 = sld [smem:[#allocation7_spill]] }
  0x11   :  { %5011 = vmatprep.subr.bf16.mxu0 %v5010_v3  ;;  %v5038_v28 = vpack.c.bf16 %v268_v26, %v266_v25  ;;  %v5040_v31 = vpack.c.bf16 %v267_v30, %v265_v29  ;;  %v5514_v38 = vld [vmem:[%s6152_s30 + $0x10] sm:$0xff]  ;;  %v5526_v53 = vld [vmem:[%s6152_s30 + $0x18] sm:$0xff]  ;;  %v5540_v59 = vld [vmem:[%s6152_s30 + $0x8] sm:$0xff] }
  0x12   :  { %5013 = vmatpush3.bf16.msra.mxu0 %v5010_v3  ;;  %5025 = vmatpush3.bf16.msra.mxu1 %v5022_v12  ;;  %v5545_v60 = vld [vmem:[%s6152_s30 + $0x20] sm:$0xff]  ;;  %v5554_v62 = vld [vmem:[%s6152_s30 + $0x28] sm:$0xff]  ;;  %v5559_v63 = vld [vmem:[%s6152_s30 + $0x30] sm:$0xff] }
  0x13   :  { %5015 = vmatprep.subr.bf16.mxu0 %v5014_v6  ;;  %5027 = vmatprep.subr.bf16.mxu1 %v5026_v15  ;;  %v5568_v7 = vld [vmem:[%s6152_s30 + $0x38] sm:$0xff]  ;;  %v5573_v8 = vld [vmem:[%s6152_s30 + $0x40] sm:$0xff]  ;;  %v5582_v13 = vld [vmem:[%s6152_s30 + $0x48] sm:$0xff] }
  0x14   :  { %v5587_v14 = vld [vmem:[%s6152_s30 + $0x50] sm:$0xff]  ;;  %v5601_v17 = vld [vmem:[%s6152_s30 + $0x60] sm:$0xff]  ;;  %v5611_v18 = vld [vmem:[%s6152_s30 + $0x68] sm:$0xff] }
  0x15   :  { %v1065_v25 = vld [vmem:[%s6154_s16] sm:$0xff]  ;;  %v1066_v26 = vld [vmem:[%s6154_s16 + $0x8] sm:$0xff]  ;;  %v1067_v30 = vld [vmem:[%s6154_s16 + $0x10] sm:$0xff] }
  0x16   :  { %5017 = vmatpush3.bf16.msra.mxu0 %v5014_v6  ;;  %5029 = vmatpush3.bf16.msra.mxu1 %v5026_v15  ;;  %v4373_v20 = vld [vmem:[%s6153_s0] ss:$0 sm:$0xff]  ;;  %v5074_v29 = vpack.c.bf16 %v1066_v26, %v1065_v25 }
  0x17   :  { %5031 = vmatprep.subr.bf16.mxu1 %v5030_v19  ;;  %5035 = vmatprep.subr.bf16.mxu0 %v5034_v23 }
  0x19   :  { %4653 = vmatmul.mubr.msk.f32.vlgmr.msra.gmra.mrb[0].mxu0 %vm89_vm0, %v88_v16  ;;  %v5596_v16 = vld [vmem:[%s6152_s30 + $0x58] sm:$0xff] }
  0x1a   :  { %5033 = vmatpush3.bf16.msra.mxu1 %v5030_v19  ;;  %5037 = vmatpush1.bf16.msra.mxu0 %v5036_v27  ;;  %v5285_v19 = vmov 0.0|0.0  }
  0x1b   :  { %5039 = vmatprep.subr.bf16.mxu0 %v5038_v28  ;;  %339 = vmatprep.mubr.f32.mxu0 %v5281_v34  ;;  %v991_v28 = vld [vmem:[%s6155_s10] sm:$0xff] }
  0x1e   :  { %5041 = vmatpush1.bf16.msra.mxu0 %v5040_v31  ;;  %v1068_v31 = vld [vmem:[%s6154_s16 + $0x18] sm:$0xff]  ;;  %s5287_s16 = smov 112  }
  0x1f   :  { %5070 = vmatprep.subr.bf16.mxu0 %v5285_v19 }
  0xec   :  { %v4654_v32 = vpop.f32.mrb[0].mxu0 }
  0xed   :  { %v162_v33 = vpop.f32.mrb[1].mxu0 }
  0xee   :  { %4671 = vmatprep.mubr.msk.f32.mxu1 %vm179_vm1, %v162_v33  ;;  %v1142_v33 = vld [vmem:[%s6156_s28] sm:$0xff] }
  0xef   :  { %4672 = vmatmul.mubr.msk.f32.vlgmr.msra.gmra.mrb[0].mxu1 %vm179_vm1, %v4654_v32  ;;  %v5077_v32 = vpack.c.bf16 %v1068_v31, %v1067_v30  ;;  %v1763_v31 = vld [vmem:[%s6112_s5] sm:$0xff] }
  0xf0   :  { %4678 = vmatprep.mubr.msk.f32.mxu1 %vm365_vm2, %v5514_v38 }
 0x1c2   :  { %v4673_v35 = vpop.f32.mrb[0].mxu1 }
 0x1c3   :  { %v252_v36 = vpop.f32.mrb[1].mxu1 }
 0x1c4   :  { %4345 = vmatmul.mubr.msk.f32.vlgmr.msra.gmra.mrb[2].mxu0 %vm89_vm0, %v252_v36 }
 0x1c5   :  { %345 = vmatprep.mubr.f32.mxu0 %v5281_v34 }
 0x1c8   :  { %4346 = vmatmul.mubr.msk.f32.gmra.mrb[4].mxu0 %vm89_vm0, %v4673_v35  ;;  %v1143_v35 = vld [vmem:[%s6156_s28 + $0x8] sm:$0xff] }
 0x1c9   :  { %4727 = vmatprep.mubr.msk.f32.mxu0 %vm5286_vm3, %v5281_v34  ;;  %v5080_v36 = vpack.c.bf16 %v1143_v35, %v1142_v33  ;;  %v2081_v35 = vld [vmem:[%s6113_s7] sm:$0xff] }
 0x297   :  { %v341_v37 = vpop.f32.mrb[2].mxu0 }
 0x298   :  { %v343_v39 = vpop.f32.mrb[3].mxu0 }
 0x29b   :  { %v347_v40 = vpop.f32.mrb[4].mxu0 }
 0x29c   :  { %v349_v41 = vpop.f32.mrb[5].mxu0  ;;  %v5238_v42 = vpack.i.bf16 %v347_v40, %v341_v37  ;;  %v5046_v43 = vpack.c.bf16 %v347_v40, %v341_v37 }
 0x29d   :  { %v5248_v44 = vpack.i.bf16 %v349_v41, %v343_v39  ;;  %v5058_v45 = vpack.c.bf16 %v349_v41, %v343_v39 }
 0x29e   :  { %5239 = vrot.lane.b32.xlu1 %v5238_v42, %s5282_s9  ;;  %5229 = vrot.lane.b32.xlu0 %v5238_v42, %s5283_s1 }
 0x2a2   :  { %5234 = vrot.lane.b32.xlu0 %v5238_v42, %s5284_s18  ;;  %5244 = vrot.lane.b32.xlu1 %v5248_v44, %s5283_s1 }
 0x2a6   :  { %5249 = vrot.lane.b32.xlu0 %v5248_v44, %s5284_s18  ;;  %v5670_v44 = vld [vmem:[%s6157_s11 + $0x8] sm:$0xff] }
 0x310   :  { %v5230_v46 = vpop.permute.xlu0 %5229  ;;  %v5240_v56 = vpop.permute.xlu1 %5239 }
 0x311   :  { %v5232_v47 = vunpack.i.h.bf16 %v5230_v46  ;;  %v5231_v48 = vunpack.i.l.bf16 %v5230_v46  ;;  %v5242_v57 = vunpack.i.h.bf16 %v5240_v56  ;;  %v5241_v58 = vunpack.i.l.bf16 %v5240_v56  ;;  %v5680_v46 = vld [vmem:[%s6157_s11] sm:$0xff]  ;;  %v1689_v56 = vld [vmem:[%s6158_s3 + $0x8] sm:$0xff] }
 0x313   :  { %v5042_v49 = vpack.c.bf16 %v5232_v47, %v5231_v48  ;;  %v5054_v61 = vpack.c.bf16 %v5242_v57, %v5241_v58  ;;  %v5685_v47 = vld [vmem:[%s6157_s11 + $0x18] sm:$0xff] }
 0x314   :  { %v5235_v50 = vpop.permute.xlu0 %5234  ;;  %v5245_v3 = vpop.permute.xlu1 %5244 }
 0x315   :  { %v5237_v51 = vunpack.i.h.bf16 %v5235_v50  ;;  %v5236_v52 = vunpack.i.l.bf16 %v5235_v50  ;;  %5043 = vmatprep.subr.bf16.mxu1 %v5042_v49  ;;  %v5247_v5 = vunpack.i.h.bf16 %v5245_v3  ;;  %v5246_v6 = vunpack.i.l.bf16 %v5245_v3  ;;  %v5697_v50 = vld [vmem:[%s6157_s11 + $0x10] sm:$0xff] }
 0x316   :  { %5045 = vmatpush3.bf16.msra.mxu1 %v5042_v49 }
 0x317   :  { %5047 = vmatprep.subr.bf16.mxu1 %v5046_v43  ;;  %v5050_v55 = vpack.c.bf16 %v5237_v51, %v5236_v52  ;;  %v5062_v9 = vpack.c.bf16 %v5247_v5, %v5246_v6  ;;  %v5710_v52 = vld [vmem:[%s6157_s11 + $0x20] sm:$0xff] }
 0x318   :  { %v5250_v10 = vpop.permute.xlu0 %5249 }
 0x319   :  { %4679 = vmatmul.mubr.msk.f32.vlgmr.msra.gmra.mrb[2].mxu1 %vm365_vm2, %v5526_v53  ;;  %v5252_v11 = vunpack.i.h.bf16 %v5250_v10  ;;  %v5251_v12 = vunpack.i.l.bf16 %v5250_v10 }
 0x31a   :  { %5049 = vmatpush3.bf16.msra.mxu1 %v5046_v43  ;;  %4685 = vmatprep.mubr.msk.f32.mxu1 %vm365_vm2, %v5531_v54 }
 0x31b   :  { %5051 = vmatprep.subr.bf16.mxu1 %v5050_v55  ;;  %v5066_v15 = vpack.c.bf16 %v5252_v11, %v5251_v12 }
 0x321   :  { %4686 = vmatmul.mubr.msk.f32.vlgmr.msra.gmra.mrb[2].mxu1 %vm365_vm2, %v5540_v59 }
 0x322   :  { %5053 = vmatpush3.bf16.msra.mxu1 %v5050_v55  ;;  %4692 = vmatprep.mubr.msk.f32.mxu1 %vm365_vm2, %v5545_v60  ;;  %v1688_v55 = vld [vmem:[%s6158_s3] sm:$0xff] }
 0x323   :  { %5055 = vmatprep.subr.bf16.mxu1 %v5054_v61  ;;  %v5083_v57 = vpack.c.bf16 %v1689_v56, %v1688_v55  ;;  %v2087_v55 = vld [vmem:[%s6113_s7 + $0x30] sm:$0xff]  ;;  %v2088_v56 = vld [vmem:[%s6113_s7 + $0x38] sm:$0xff] }
 0x329   :  { %4693 = vmatmul.mubr.msk.f32.vlgmr.msra.gmra.mrb[2].mxu1 %vm365_vm2, %v5554_v62 }
 0x32a   :  { %5057 = vmatpush3.bf16.msra.mxu1 %v5054_v61  ;;  %4699 = vmatprep.mubr.msk.f32.mxu1 %vm365_vm2, %v5559_v63 }
 0x32b   :  { %5059 = vmatprep.subr.bf16.mxu1 %v5058_v45 }
 0x331   :  { %4700 = vmatmul.mubr.msk.f32.vlgmr.msra.gmra.mrb[2].mxu1 %vm365_vm2, %v5568_v7 }
 0x332   :  { %5061 = vmatpush3.bf16.msra.mxu1 %v5058_v45  ;;  %4706 = vmatprep.mubr.msk.f32.mxu1 %vm365_vm2, %v5573_v8 }
 0x333   :  { %5063 = vmatprep.subr.bf16.mxu1 %v5062_v9 }
 0x339   :  { %4707 = vmatmul.mubr.msk.f32.vlgmr.msra.gmra.mrb[2].mxu1 %vm365_vm2, %v5582_v13 }
 0x33a   :  { %5065 = vmatpush3.bf16.msra.mxu1 %v5062_v9  ;;  %4713 = vmatprep.mubr.msk.f32.mxu1 %vm365_vm2, %v5587_v14 }
 0x33b   :  { %5067 = vmatprep.subr.bf16.mxu1 %v5066_v15 }
 0x341   :  { %4714 = vmatmul.mubr.msk.f32.vlgmr.msra.gmra.mrb[2].mxu1 %vm365_vm2, %v5596_v16 }
 0x342   :  { %5069 = vmatpush3.bf16.msra.mxu1 %v5066_v15  ;;  %4720 = vmatprep.mubr.msk.f32.mxu1 %vm365_vm2, %v5601_v17 }
 0x343   :  { %4763 = vmatprep.subr.mxu1 %v5281_v34 }
 0x349   :  { %4721 = vmatmul.mubr.msk.f32.vlgmr.msra.gmra.mrb[2].mxu1 %vm365_vm2, %v5611_v18 }
 0x34a   :  { %4765 = vmatprep.mubr.msk.f32.mxu1 %vm5286_vm3, %v5281_v34 }
 0x41c   :  { %v4722_v21 = vpop.f32.mrb[2].mxu1 }
 0x41d   :  { %v5623_v22 = vadd.f32 %v4722_v21, %v4373_v20  ;;  %v973_v23 = vpop.f32.mrb[3].mxu1 }
 0x41e   :  { %v5625_v24 = vadd.f32 %v4373_v20, %v973_v23  ;;  %v4386_v23 = vld [vmem:[%s6153_s0 + $0x2] ss:$0 sm:$0xff] }
 0x420   :  { %v5071_v27 = vpack.c.bf16 %v5623_v22, %v5625_v24 }
 0x422   :  { %5072 = vmatpush3.bf16.msra.mxu0 %v5071_v27 }
 0x423   :  { %5073 = vmatprep.subr.bf16.mxu0 %v5285_v19 }
 0x425   :  { %4728 = vmatmul.mubr.msk.f32.vlgmr.msra.gmra.mrb[6].mxu0 %vm365_vm2, %v991_v28  ;;  %v1614_v28 = vld [vmem:[%s6111_s17] sm:$0xf]  ;;  %s5289_s17 = smov 120  }
 0x426   :  { %5075 = vmatpush3.bf16.msra.mxu0 %v5074_v29  ;;  %4738 = vmatprep.mubr.msk.f32.mxu0 %vm5286_vm3, %v5281_v34 }
 0x427   :  { %5076 = vmatprep.subr.bf16.mxu0 %v5285_v19 }
 0x42a   :  { %5078 = vmatpush3.bf16.msra.mxu0 %v5077_v32 }
 0x42b   :  { %5079 = vmatprep.subr.bf16.mxu0 %v5285_v19 }
 0x4f8   :  { %v1061_v37 = vpop.f32.mrb[6].mxu0 }
 0x4f9   :  { %v4729_v39 = vpop.f32.mrb[7].mxu0  ;;  %4739 = vmatmul.mubr.msk.f32.vlgmr.msra.gmra.mrb[8].mxu0 %vm89_vm0, %v1061_v37  ;;  %v2083_v37 = vld [vmem:[%s6113_s7 + $0x10] sm:$0xff] }
 0x4fa   :  { %5081 = vmatpush3.bf16.msra.mxu0 %v5080_v36  ;;  %4745 = vmatprep.mubr.msk.f32.mxu0 %vm5286_vm3, %v5281_v34  ;;  %v2082_v36 = vld [vmem:[%s6113_s7 + $0x8] sm:$0xff]  ;;  %v2084_v39 = vld [vmem:[%s6113_s7 + $0x18] sm:$0xff] }
 0x4fb   :  { %4748 = vmatprep.subr.mxu0 %v5281_v34 }
 0x5cc   :  { %v1138_v40 = vpop.f32.mrb[8].mxu0 }
 0x5cd   :  { %v4740_v41 = vpop.f32.mrb[9].mxu0  ;;  %4746 = vmatmul.mubr.msk.f32.vlgmr.msra.gmra.mrb[10].mxu0 %vm365_vm2, %v1138_v40  ;;  %v5085_v40 = vpack.c.bf16 %v2082_v36, %v2081_v35 }
 0x5ce   :  { %4750 = vmatprep.mubr.msk.f32.mxu0 %vm5286_vm3, %v5281_v34 }
 0x6a0   :  { %v1213_v42 = vpop.f32.mrb[10].mxu0 }
 0x6a1   :  { %1373 = vrot.lane.b32.xlu0 %v1213_v42, %s5283_s1  ;;  %1221 = vrot.lane.b32.xlu1 %v1213_v42, %s5287_s16  ;;  %v4747_v43 = vpop.f32.mrb[11].mxu0 }
 0x6a5   :  { %1531 = vrot.lane.b32.xlu0 %v1213_v42, %s5284_s18  ;;  %1452 = vrot.lane.b32.xlu1 %v1213_v42, %s5288_s29 }
 0x713   :  { %v1222_v45 = vpop.permute.xlu1 %1221  ;;  %v1374_v48 = vpop.permute.xlu0 %1373 }
 0x714   :  { %4749 = vmatpush3.msra.mxu0 %v1222_v45  ;;  %v5089_v45 = vpack.c.bf16 %v2084_v39, %v2083_v37 }
 0x715   :  { %4751 = vmatmul.mubr.msk.f32.vlgmr.msra.gmra.mrb[12].mxu0 %vm1224_vm4, %v5670_v44  ;;  %4753 = vmatprep.subr.mxu0 %v5281_v34 }
 0x716   :  { %4754 = vmatpush3.msra.mxu0 %v1213_v42  ;;  %4755 = vmatprep.mubr.msk.f32.mxu0 %vm5286_vm3, %v5281_v34  ;;  %v5759_v42 = vld [vmem:[%s6114_s12] sm:$0xf] }
 0x717   :  { %v1453_v49 = vpop.permute.xlu1 %1452  ;;  %4758 = vmatprep.subr.mxu0 %v5281_v34  ;;  %v1532_v51 = vpop.permute.xlu0 %1531 }
 0x718   :  { %4764 = vmatpush3.msra.mxu1 %v1453_v49  ;;  %v2086_v49 = vld [vmem:[%s6113_s7 + $0x28] sm:$0xff] }
 0x719   :  { %4756 = vmatmul.mubr.msk.f32.vlgmr.msra.gmra.mrb[14].mxu0 %vm1224_vm4, %v5680_v46  ;;  %4766 = vmatmul.mubr.msk.f32.vlgmr.msra.gmra.mrb[4].mxu1 %vm1224_vm4, %v5685_v47 }
 0x71a   :  { %4759 = vmatpush3.msra.mxu0 %v1374_v48  ;;  %4760 = vmatprep.mubr.msk.f32.mxu0 %vm5286_vm3, %v5281_v34  ;;  %v2085_v48 = vld [vmem:[%s6113_s7 + $0x20] sm:$0xff] }
 0x71b   :  { %4768 = vmatprep.subr.mxu0 %v5281_v34  ;;  %4773 = vmatprep.subr.mxu1 %v5281_v34 }
 0x71c   :  { %4775 = vmatprep.mubr.msk.f32.mxu1 %vm5286_vm3, %v5281_v34 }
 0x71d   :  { %4761 = vmatmul.mubr.msk.f32.vlgmr.msra.gmra.mrb[16].mxu0 %vm1224_vm4, %v5697_v50 }
 0x71e   :  { %4769 = vmatpush3.msra.mxu0 %v1532_v51  ;;  %4770 = vmatprep.mubr.msk.f32.mxu0 %vm5286_vm3, %v5281_v34  ;;  %v5093_v51 = vpack.c.bf16 %v2086_v49, %v2085_v48 }
 0x71f   :  { %5082 = vmatprep.subr.bf16.mxu0 %v5285_v19 }
 0x721   :  { %4771 = vmatmul.mubr.msk.f32.vlgmr.msra.gmra.mrb[18].mxu0 %vm1224_vm4, %v5710_v52 }
 0x722   :  { %4782 = vmatprep.mubr.msk.f32.mxu0 %vm5286_vm3, %v5281_v34  ;;  %5084 = vmatpush3.bf16.msra.mxu0 %v5083_v57  ;;  %v5097_v57 = vpack.c.bf16 %v2088_v56, %v2087_v55 }
 0x723   :  { %4790 = vmatprep.subr.mxu0 %v5281_v34 }
 0x7e8   :  { %v1294_v58 = vpop.f32.mrb[12].mxu0 }
 0x7e9   :  { %v4752_v61 = vpop.f32.mrb[13].mxu0 }
 0x7ea   :  { %v2859_v61 = vld [vmem:[%s6115_s4 + $0x8] sm:$0xff] }
 0x7ec   :  { %v1367_v3 = vpop.f32.mrb[14].mxu0  ;;  %v1524_v5 = vpop.f32.mrb[4].mxu1 }
 0x7ed   :  { %v1368_v6 = vadd.f32 %v1367_v3, %v1294_v58  ;;  %v4757_v9 = vpop.f32.mrb[15].mxu0  ;;  %v4767_v10 = vpop.f32.mrb[5].mxu1  ;;  %v2858_v58 = vld [vmem:[%s6115_s4] sm:$0xff] }
 0x7ee   :  { %v5138_v3 = vpack.c.bf16 %v2859_v61, %v2858_v58  ;;  %v2193_v9 = vld [vmem:[%s6116_s2 + $0x10] sm:$0xff]  ;;  %v2196_v10 = vld [vmem:[%s6116_s2 + $0x28] sm:$0xff] }
 0x7f0   :  { %v1445_v11 = vpop.f32.mrb[16].mxu0 }
 0x7f1   :  { %v1449_v12 = vadd.f32 %v1445_v11, %v1368_v6  ;;  %v4762_v15 = vpop.f32.mrb[17].mxu0  ;;  %v2191_v6 = vld [vmem:[%s6116_s2] sm:$0xff]  ;;  %v2198_v11 = vld [vmem:[%s6116_s2 + $0x38] sm:$0xff] }
 0x7f2   :  { %v5832_v15 = vld [vmem:[%s6114_s12 + $0x8] sm:$0xf] }
 0x7f3   :  { %v1528_v20 = vadd.f32 %v1524_v5, %v1449_v12 }
 0x7f4   :  { %v1603_v21 = vpop.f32.mrb[18].mxu0 }
 0x7f5   :  { %v1607_v25 = vadd.f32 %v1603_v21, %v1528_v20  ;;  %v4772_v26 = vpop.f32.mrb[19].mxu0  ;;  %v5103_v20 = vpack.c.bf16 %v2193_v9, %v2191_v6  ;;  %v5105_v21 = vpack.c.bf16 %v2198_v11, %v2196_v10 }
 0x7f7   :  { %v1613_v27 = vadd.f32 %v4386_v23, %v1607_v25  ;;  %v2195_v23 = vld [vmem:[%s6116_s2 + $0x20] sm:$0xff]  ;;  %v2197_v25 = vld [vmem:[%s6116_s2 + $0x30] sm:$0xff] }
 0x7f8   :  { %v5107_v26 = vpack.c.bf16 %v2197_v25, %v2195_v23  ;;  %v4435_v25 = vld [vmem:[%s6153_s0 + $0x5] ss:$0 sm:$0xff] }
 0x7f9   :  { %4774 = vmatpush3.msra.mxu1 %v1613_v27 }
 0x7fa   :  { %4776 = vmatmul.mubr.msk.f32.vlgmr.msra.gmra.mrb[6].mxu1 %vm1224_vm4, %v1614_v28  ;;  %4785 = vmatprep.subr.mxu1 %v5281_v34 }
 0x7fb   :  { %4787 = vmatprep.mubr.msk.f32.mxu1 %vm5286_vm3, %v5281_v34  ;;  %4786 = vmatpush3.msra.mxu1 %v1763_v31 }
 0x7fc   :  { %4795 = vmatprep.subr.mxu1 %v5281_v34 }
 0x8cd   :  { %v1684_v29 = vpop.f32.mrb[6].mxu1 }
 0x8ce   :  { %v4777_v30 = vpop.f32.mrb[7].mxu1  ;;  %4783 = vmatmul.mubr.msk.f32.vlgmr.msra.gmra.mrb[20].mxu0 %vm365_vm2, %v1684_v29 }
 0x8cf   :  { %4792 = vmatprep.mubr.msk.f32.mxu0 %vm5286_vm3, %v5281_v34 }
 0x9a1   :  { %v1759_v32 = vpop.f32.mrb[20].mxu0 }
 0x9a2   :  { %v4784_v33 = vpop.f32.mrb[21].mxu0  ;;  %4788 = vmatmul.mubr.msk.f32.vlgmr.msra.gmra.mrb[8].mxu1 %vm1224_vm4, %v1759_v32 }
 0x9a3   :  { %4797 = vmatprep.mubr.msk.f32.mxu1 %vm5286_vm3, %v5281_v34 }
 0xa75   :  { %v1833_v41 = vpop.f32.mrb[8].mxu1 }
 0xa76   :  { %1997 = vrot.lane.b32.xlu0 %v1833_v41, %s5287_s16  ;;  %1841 = vrot.lane.b32.xlu1 %v1833_v41, %s5289_s17  ;;  %v4789_v43 = vpop.f32.mrb[9].mxu1 }
 0xa77   :  { %4796 = vmatpush3.msk.msra.mxu1 %vm1847_vm5, %v1833_v41 }
 0xa78   :  { %5086 = vmatprep.subr.bf16.mxu1 %v5085_v40  ;;  %4798 = vmatmul.mubr.msk.f32.vlgmr.msra.gmra.mrb[10].mxu1 %vm1843_vm6, %v5759_v42 }
 0xa79   :  { %5088 = vmatpush3.bf16.msra.mxu1 %v5085_v40  ;;  %4821 = vmatprep.mubr.msk.f32.mxu1 %vm179_vm1, %v5428_v0 }
 0xa7a   :  { %5090 = vmatprep.subr.bf16.mxu1 %v5089_v45 }
 0xa7d   :  { %5092 = vmatpush3.bf16.msra.mxu1 %v5089_v45 }
 0xa7e   :  { %5094 = vmatprep.subr.bf16.mxu1 %v5093_v51 }
 0xa81   :  { %5096 = vmatpush3.bf16.msra.mxu1 %v5093_v51 }
 0xa82   :  { %5098 = vmatprep.subr.bf16.mxu1 %v5097_v57 }
 0xa85   :  { %5100 = vmatpush3.bf16.msra.mxu1 %v5097_v57 }
 0xa86   :  { %5137 = vmatprep.subr.bf16.mxu1 %v5285_v19 }
 0xa88   :  { %4822 = vmatmul.mubr.msk.f32.vlgmr.msra.gmra.mrb[12].mxu1 %vm179_vm1, %v5433_v1  ;;  %v2192_v1 = vld [vmem:[%s6116_s2 + $0x8] sm:$0xff] }
 0xa89   :  { %4824 = vmatprep.mubr.msk.f32.mxu1 %vm179_vm1, %v5438_v2  ;;  %5139 = vmatpush3.bf16.msra.mxu1 %v5138_v3  ;;  %v2194_v2 = vld [vmem:[%s6116_s2 + $0x18] sm:$0xff] }
 0xa8a   :  { %4883 = vmatprep.subr.mxu1 %v5281_v34  ;;  %v5101_v5 = vpack.c.bf16 %v2194_v2, %v2192_v1 }
 0xa8c   :  { %4825 = vmatmul.mubr.msk.f32.gmra.mrb[14].mxu1 %vm179_vm1, %v5445_v4  ;;  %v5808_v4 = vld [vmem:[%s6114_s12 + $0x4] sm:$0xf] }
 0xa8d   :  { %4880 = vmatprep.mubr.msk.f32.mxu1 %vm5286_vm3, %v5281_v34 }
 0xa90   :  { %4881 = vmatmul.mubr.msk.f32.vlgmr.msra.gmra.mrb[16].mxu1 %vm365_vm2, %v1613_v27 }
 0xa91   :  { %4885 = vmatprep.mubr.msk.f32.mxu1 %vm5286_vm3, %v5281_v34 }
 0xae8   :  { %v1842_v19 = vpop.permute.xlu1 %1841  ;;  %v1998_v12 = vpop.permute.xlu0 %1997 }
 0xae9   :  { %4791 = vmatpush3.msk.msra.mxu0 %vm1847_vm5, %v1842_v19 }
 0xaea   :  { %4793 = vmatmul.mubr.msk.f32.vlgmr.msra.gmra.mrb[22].mxu0 %vm1843_vm6, %v5808_v4  ;;  %4800 = vmatprep.subr.mxu0 %v5281_v34 }
 0xaeb   :  { %4801 = vmatpush3.msk.msra.mxu0 %vm1847_vm5, %v1998_v12  ;;  %4802 = vmatprep.mubr.msk.f32.mxu0 %vm5286_vm3, %v5281_v34 }
 0xaec   :  { %5102 = vmatprep.subr.bf16.mxu0 %v5101_v5 }
 0xaee   :  { %4803 = vmatmul.mubr.msk.f32.vlgmr.msra.gmra.mrb[24].mxu0 %vm1843_vm6, %v5832_v15 }
 0xaef   :  { %5104 = vmatpush1.bf16.msra.mxu0 %v5103_v20  ;;  %2269 = vmatprep.mubr.f32.mxu0 %v5281_v34 }
 0xaf0   :  { %5106 = vmatprep.subr.bf16.mxu0 %v5105_v21 }
 0xaf3   :  { %5108 = vmatpush1.bf16.msra.mxu0 %v5107_v26 }
 0xaf6   :  { %4404 = vmatmul.mubr.msk.f32.vlgmr.msra.gmra.mrb[26].mxu0 %vm89_vm0, %v5625_v24 }
 0xaf7   :  { %2275 = vmatprep.mubr.f32.mxu0 %v5281_v34 }
 0xafa   :  { %4405 = vmatmul.mubr.msk.f32.gmra.mrb[28].mxu0 %vm89_vm0, %v5623_v22 }
 0xafb   :  { %4831 = vmatprep.mubr.msk.f32.mxu0 %vm365_vm2, %v5514_v38 }
 0xb4b   :  { %v1991_v27 = vpop.f32.mrb[10].mxu1 }
 0xb4c   :  { %v4799_v28 = vpop.f32.mrb[11].mxu1 }
 0xb5b   :  { %v5850_v29 = vpop.f32.mrb[12].mxu1 }
 0xb5c   :  { %v5852_v30 = vpop.f32.mrb[13].mxu1 }
 0xb5f   :  { %v5854_v31 = vpop.f32.mrb[14].mxu1 }
 0xb60   :  { %v5856_v32 = vpop.f32.mrb[15].mxu1 }
 0xb63   :  { %v2929_v33 = vpop.f32.mrb[16].mxu1 }
 0xb64   :  { %v4882_v24 = vpop.f32.mrb[17].mxu1 }
 0xbbd   :  { %v1916_v35 = vpop.f32.mrb[22].mxu0 }
 0xbbe   :  { %v1992_v36 = vadd.f32 %v1991_v27, %v1916_v35  ;;  %v4794_v37 = vpop.f32.mrb[23].mxu0  ;;  %v3758_v35 = vld [vmem:[%s6120_s21] sm:$0xff] }
 0xbbf   :  { %v3929_v37 = vld [vmem:[%s6121_s8 + $0x8] sm:$0xff] }
 0xbc1   :  { %v2070_v39 = vpop.f32.mrb[24].mxu0 }
 0xbc2   :  { %v5858_v22 = vadd.f32 %v2070_v39, %v1992_v36  ;;  %v4804_v40 = vpop.f32.mrb[25].mxu0  ;;  %v3928_v36 = vld [vmem:[%s6121_s8] sm:$0xff]  ;;  %v3930_v39 = vld [vmem:[%s6121_s8 + $0x10] sm:$0xff] }
 0xbc9   :  { %v2271_v38 = vpop.f32.mrb[26].mxu0 }
 0xbca   :  { %v2273_v41 = vpop.f32.mrb[27].mxu0 }
 0xbcd   :  { %v2277_v43 = vpop.f32.mrb[28].mxu0 }
 0xbce   :  { %v2279_v45 = vpop.f32.mrb[29].mxu0  ;;  %v5258_v48 = vpack.i.bf16 %v2277_v43, %v2271_v38  ;;  %v5113_v49 = vpack.c.bf16 %v2277_v43, %v2271_v38  ;;  %v3932_v38 = vld [vmem:[%s6121_s8 + $0x20] sm:$0xff] }
 0xbcf   :  { %v5273_v51 = vpack.i.bf16 %v2279_v45, %v2273_v41  ;;  %v5125_v55 = vpack.c.bf16 %v2279_v45, %v2273_v41  ;;  %v3933_v41 = vld [vmem:[%s6121_s8 + $0x28] sm:$0xff]  ;;  %v3934_v45 = vld [vmem:[%s6121_s8 + $0x30] sm:$0xff] }
 0xbd0   :  { %5259 = vrot.lane.b32.xlu0 %v5258_v48, %s5284_s18  ;;  %5254 = vrot.lane.b32.xlu1 %v5258_v48, %s5283_s1  ;;  %v5152_v43 = vpack.c.bf16 %v3933_v41, %v3932_v38 }
 0xbd4   :  { %5264 = vrot.lane.b32.xlu1 %v5258_v48, %s5282_s9  ;;  %5269 = vrot.lane.b32.xlu0 %v5273_v51, %s5283_s1  ;;  %v3935_v48 = vld [vmem:[%s6121_s8 + $0x38] sm:$0xff] }
 0xbd8   :  { %5274 = vrot.lane.b32.xlu1 %v5273_v51, %s5284_s18  ;;  %2934 = vrot.lane.b32.xlu0 %v2929_v33, %s5287_s16  ;;  %v5278_v51 = vld [vmem:[%s6148_s15 + $0x8] sm:$0xff] }
 0xbdc   :  { %3077 = vrot.lane.b32.xlu1 %v2929_v33, %s5283_s1  ;;  %3151 = vrot.lane.b32.xlu0 %v2929_v33, %s5288_s29 }
 0xbe0   :  { %3225 = vrot.lane.b32.xlu1 %v2929_v33, %s5284_s18 }
 0xc42   :  { %v5260_v56 = vpop.permute.xlu0 %5259  ;;  %v5255_v57 = vpop.permute.xlu1 %5254 }
 0xc43   :  { %v5257_v58 = vunpack.i.h.bf16 %v5255_v57  ;;  %v5256_v61 = vunpack.i.l.bf16 %v5255_v57  ;;  %v5262_v2 = vunpack.i.h.bf16 %v5260_v56  ;;  %v5261_v19 = vunpack.i.l.bf16 %v5260_v56  ;;  %v5280_v56 = vld [vmem:[%s6148_s15 + $0x18] sm:$0xff]  ;;  %v4427_v57 = vld [vmem:[%s6153_s0 + $0x3] ss:$0 sm:$0xff] }
 0xc45   :  { %v5109_v3 = vpack.c.bf16 %v5257_v58, %v5256_v61  ;;  %v5117_v9 = vpack.c.bf16 %v5262_v2, %v5261_v19  ;;  %v3841_v58 = vld [vmem:[%s6122_s22] sm:$0xff]  ;;  %v3842_v61 = vld [vmem:[%s6122_s22 + $0x8] sm:$0xff] }
 0xc46   :  { %v5270_v1 = vpop.permute.xlu0 %5269  ;;  %v5265_v5 = vpop.permute.xlu1 %5264  ;;  %v5140_v19 = vpack.c.bf16 %v3842_v61, %v3841_v58 }
 0xc47   :  { %5110 = vmatprep.subr.bf16.mxu0 %v5109_v3  ;;  %v5267_v11 = vunpack.i.h.bf16 %v5265_v5  ;;  %v5266_v12 = vunpack.i.l.bf16 %v5265_v5  ;;  %v3759_v5 = vld [vmem:[%s6120_s21 + $0x8] sm:$0xff] }
 0xc48   :  { %5112 = vmatpush3.bf16.msra.mxu0 %v5109_v3 }
 0xc49   :  { %5114 = vmatprep.subr.bf16.mxu0 %v5113_v49 }
 0xc4a   :  { %v2935_v6 = vpop.permute.xlu0 %2934  ;;  %v5275_v10 = vpop.permute.xlu1 %5274 }
 0xc4b   :  { %4832 = vmatmul.mubr.msk.f32.vlgmr.msra.gmra.mrb[30].mxu0 %vm365_vm2, %v5526_v53  ;;  %4884 = vmatpush3.msra.mxu1 %v2935_v6  ;;  %v5121_v53 = vpack.c.bf16 %v5267_v11, %v5266_v12 }
 0xc4c   :  { %5116 = vmatpush3.bf16.msra.mxu0 %v5113_v49  ;;  %4886 = vmatmul.mubr.msk.f32.vlgmr.msra.gmra.mrb[18].mxu1 %vm1224_vm4, %v5670_v44  ;;  %v5156_v49 = vpack.c.bf16 %v3935_v48, %v3934_v45 }
 0xc4d   :  { %4888 = vmatprep.subr.mxu1 %v5281_v34  ;;  %5118 = vmatprep.subr.bf16.mxu0 %v5117_v9 }
 0xc4e   :  { %4889 = vmatpush3.msra.mxu1 %v2929_v33  ;;  %4838 = vmatprep.mubr.msk.f32.mxu0 %vm365_vm2, %v5531_v54  ;;  %v3078_v44 = vpop.permute.xlu1 %3077  ;;  %v3152_v54 = vpop.permute.xlu0 %3151 }
 0xc4f   :  { %4890 = vmatprep.mubr.msk.f32.mxu1 %vm5286_vm3, %v5281_v34  ;;  %4893 = vmatprep.subr.mxu1 %v5281_v34 }
 0xc53   :  { %4839 = vmatmul.mubr.msk.f32.vlgmr.msra.gmra.mrb[30].mxu0 %vm365_vm2, %v5540_v59  ;;  %v5272_v59 = vunpack.i.h.bf16 %v5270_v1 }
 0xc54   :  { %5120 = vmatpush3.bf16.msra.mxu0 %v5117_v9  ;;  %4891 = vmatmul.mubr.msk.f32.vlgmr.msra.gmra.mrb[18].mxu1 %vm1224_vm4, %v5680_v46 }
 0xc55   :  { %5122 = vmatprep.subr.bf16.mxu0 %v5121_v53  ;;  %4894 = vmatpush3.msra.mxu1 %v3078_v44 }
 0xc56   :  { %4845 = vmatprep.mubr.msk.f32.mxu0 %vm365_vm2, %v5545_v60  ;;  %4895 = vmatprep.mubr.msk.f32.mxu1 %vm5286_vm3, %v5281_v34  ;;  %v5271_v60 = vunpack.i.l.bf16 %v5270_v1 }
 0xc57   :  { %4898 = vmatprep.subr.mxu1 %v5281_v34 }
 0xc58   :  { %v5129_v46 = vpack.c.bf16 %v5272_v59, %v5271_v60  ;;  %v3924_v59 = vld [vmem:[%s6123_s25] sm:$0xff]  ;;  %v3925_v60 = vld [vmem:[%s6123_s25 + $0x8] sm:$0xff] }
 0xc5b   :  { %4846 = vmatmul.mubr.msk.f32.vlgmr.msra.gmra.mrb[30].mxu0 %vm365_vm2, %v5554_v62  ;;  %v3226_v62 = vpop.permute.xlu1 %3225 }
 0xc5c   :  { %5124 = vmatpush3.bf16.msra.mxu0 %v5121_v53  ;;  %4896 = vmatmul.mubr.msk.f32.vlgmr.msra.gmra.mrb[18].mxu1 %vm1224_vm4, %v5697_v50  ;;  %v5276_v50 = vunpack.i.l.bf16 %v5275_v10 }
 0xc5d   :  { %5126 = vmatprep.subr.bf16.mxu0 %v5125_v55  ;;  %4899 = vmatpush3.msra.mxu1 %v3152_v54 }
 0xc5e   :  { %4852 = vmatprep.mubr.msk.f32.mxu0 %vm365_vm2, %v5559_v63  ;;  %4900 = vmatprep.mubr.msk.f32.mxu1 %vm5286_vm3, %v5281_v34  ;;  %v5277_v63 = vunpack.i.h.bf16 %v5275_v10 }
 0xc5f   :  { %4903 = vmatprep.subr.mxu1 %v5281_v34 }
 0xc60   :  { %v5133_v20 = vpack.c.bf16 %v5277_v63, %v5276_v50  ;;  %v4123_v63 = vld [vmem:[%s6124_s23] sm:$0xff] }
 0xc61   :  { %v4224_v50 = vld [vmem:[%s6125_s24] sm:$0xff] }
 0xc63   :  { %4853 = vmatmul.mubr.msk.f32.vlgmr.msra.gmra.mrb[30].mxu0 %vm365_vm2, %v5568_v7  ;;  %v3305_v7 = vld [vmem:[%s6117_s6] sm:$0xff] }
 0xc64   :  { %5128 = vmatpush3.bf16.msra.mxu0 %v5125_v55  ;;  %4901 = vmatmul.mubr.msk.f32.vlgmr.msra.gmra.mrb[18].mxu1 %vm1224_vm4, %v5685_v47  ;;  %v5279_v55 = vld [vmem:[%s6148_s15 + $0x10] sm:$0xff] }
 0xc65   :  { %5130 = vmatprep.subr.bf16.mxu0 %v5129_v46  ;;  %4904 = vmatpush3.msra.mxu1 %v3226_v62  ;;  %v3927_v62 = vld [vmem:[%s6123_s25 + $0x18] sm:$0xff] }
 0xc66   :  { %4859 = vmatprep.mubr.msk.f32.mxu0 %vm365_vm2, %v5573_v8  ;;  %4905 = vmatprep.mubr.msk.f32.mxu1 %vm5286_vm3, %v5281_v34  ;;  %v4398_v8 = vld [vmem:[%s6153_s0 + $0x4] ss:$0 sm:$0xff] }
 0xc67   :  { %4913 = vmatprep.subr.mxu1 %v5281_v34 }
 0xc6b   :  { %4860 = vmatmul.mubr.msk.f32.vlgmr.msra.gmra.mrb[30].mxu0 %vm365_vm2, %v5582_v13  ;;  %v2080_v13 = vadd.f32 %v4398_v8, %v5858_v22  ;;  %v5144_v22 = vpack.c.bf16 %v3929_v37, %v3928_v36  ;;  %v4226_v8 = vld [vmem:[%s6125_s24 + $0x10] sm:$0xff]  ;;  %v4447_v36 = vld [vmem:[%s6153_s0 + $0x7] ss:$0 sm:$0xff] }
 0xc6c   :  { %5132 = vmatpush3.bf16.msra.mxu0 %v5129_v46  ;;  %4866 = vmatprep.mubr.msk.f32.mxu0 %vm365_vm2, %v5587_v14  ;;  %v3926_v46 = vld [vmem:[%s6123_s25 + $0x10] sm:$0xff] }
 0xc6d   :  { %5134 = vmatprep.subr.bf16.mxu0 %v5133_v20  ;;  %4906 = vmatmul.mubr.msk.f32.vlgmr.msra.gmra.mrb[18].mxu1 %vm1224_vm4, %v5710_v52 }
 0xc6e   :  { %4915 = vmatprep.mubr.msk.f32.mxu1 %vm5286_vm3, %v5281_v34 }
 0xc73   :  { %4867 = vmatmul.mubr.msk.f32.vlgmr.msra.gmra.mrb[30].mxu0 %vm365_vm2, %v5596_v16 }
 0xc74   :  { %5136 = vmatpush3.bf16.msra.mxu0 %v5133_v20  ;;  %4873 = vmatprep.mubr.msk.f32.mxu0 %vm365_vm2, %v5601_v17  ;;  %v4225_v20 = vld [vmem:[%s6125_s24 + $0x8] sm:$0xff] }
 0xc75   :  { %4908 = vmatprep.subr.mxu0 %v5281_v34 }
 0xc7b   :  { %4874 = vmatmul.mubr.msk.f32.vlgmr.msra.gmra.mrb[30].mxu0 %vm365_vm2, %v5611_v18 }
 0xc7c   :  { %4909 = vmatpush3.msra.mxu0 %v3305_v7  ;;  %4910 = vmatprep.mubr.msk.f32.mxu0 %vm5286_vm3, %v5281_v34  ;;  %v5172_v7 = vpack.c.bf16 %v4225_v20, %v4224_v50 }
 0xc7d   :  { %4918 = vmatprep.subr.mxu0 %v5281_v34 }
 0xc7f   :  { %4911 = vmatmul.mubr.msk.f32.vlgmr.msra.gmra.mrb[32].mxu0 %vm1224_vm4, %v2080_v13  ;;  %v4227_v13 = vld [vmem:[%s6125_s24 + $0x18] sm:$0xff] }
 0xc80   :  { %4920 = vmatprep.mubr.msk.f32.mxu0 %vm5286_vm3, %v5281_v34 }
 0xd52   :  { %v3375_v14 = vpop.f32.mrb[32].mxu0 }
 0xd53   :  { %3526 = vrot.lane.b32.xlu1 %v3375_v14, %s5287_s16  ;;  %3380 = vrot.lane.b32.xlu0 %v3375_v14, %s5289_s17  ;;  %v4912_v16 = vpop.f32.mrb[33].mxu0 }
 0xd54   :  { %4919 = vmatpush3.msk.msra.mxu0 %vm1847_vm5, %v3375_v14  ;;  %v5176_v14 = vpack.c.bf16 %v4227_v13, %v4226_v8  ;;  %v4420_v16 = vld [vmem:[%s6153_s0 + $0x1] ss:$0 sm:$0xff] }
 0xd55   :  { %4921 = vmatmul.mubr.msk.f32.vlgmr.msra.gmra.mrb[34].mxu0 %vm1843_vm6, %v5759_v42  ;;  %4928 = vmatprep.subr.mxu0 %v5281_v34 }
 0xd56   :  { %4930 = vmatprep.mubr.msk.f32.mxu0 %vm5286_vm3, %v5281_v34 }
 0xdc5   :  { %v3381_v17 = vpop.permute.xlu0 %3380  ;;  %v3527_v18 = vpop.permute.xlu1 %3526 }
 0xdc6   :  { %4914 = vmatpush3.msk.msra.mxu1 %vm1847_vm5, %v3381_v17 }
 0xdc7   :  { %4916 = vmatmul.mubr.msk.f32.vlgmr.msra.gmra.mrb[20].mxu1 %vm1843_vm6, %v5808_v4  ;;  %4923 = vmatprep.subr.mxu1 %v5281_v34 }
 0xdc8   :  { %4924 = vmatpush3.msk.msra.mxu1 %vm1847_vm5, %v3527_v18  ;;  %4925 = vmatprep.mubr.msk.f32.mxu1 %vm5286_vm3, %v5281_v34 }
 0xdc9   :  { %4933 = vmatprep.subr.mxu1 %v5281_v34 }
 0xdcb   :  { %4926 = vmatmul.mubr.msk.f32.vlgmr.msra.gmra.mrb[22].mxu1 %vm1843_vm6, %v5832_v15  ;;  %v3607_v15 = vld [vmem:[%s6118_s19] sm:$0xff] }
 0xdcc   :  { %4935 = vmatprep.mubr.msk.f32.mxu1 %vm5286_vm3, %v5281_v34  ;;  %v3684_v34 = vld [vmem:[%s6119_s20] sm:$0xff] }
 0xdcd   :  { %4934 = vmatpush3.msra.mxu1 %v3684_v34 }
 0xdce   :  { %5145 = vmatprep.subr.bf16.mxu1 %v5144_v22 }
 0xe28   :  { %v3522_v47 = vpop.f32.mrb[34].mxu0 }
 0xe29   :  { %v4922_v52 = vpop.f32.mrb[35].mxu0 }
 0xe9a   :  { %v3450_v42 = vpop.f32.mrb[20].mxu1 }
 0xe9b   :  { %v3523_v21 = vadd.f32 %v3522_v47, %v3450_v42  ;;  %v4917_v4 = vpop.f32.mrb[21].mxu1 }
 0xe9c   :  { %v4125_v4 = vld [vmem:[%s6124_s23 + $0x10] sm:$0xff] }
 0xe9e   :  { %v3596_v23 = vpop.f32.mrb[22].mxu1 }
 0xe9f   :  { %v3600_v26 = vadd.f32 %v3596_v23, %v3523_v21  ;;  %v4927_v27 = vpop.f32.mrb[23].mxu1  ;;  %v4124_v21 = vld [vmem:[%s6124_s23 + $0x8] sm:$0xff]  ;;  %v4126_v23 = vld [vmem:[%s6124_s23 + $0x18] sm:$0xff] }
 0xea1   :  { %v3606_v28 = vadd.f32 %v4435_v25, %v3600_v26 }
 0xea3   :  { %4929 = vmatpush3.msk.msra.mxu0 %vm1847_vm5, %v3606_v28 }
 0xea4   :  { %4931 = vmatmul.mubr.msk.f32.vlgmr.msra.gmra.mrb[36].mxu0 %vm1843_vm6, %v3607_v15 }
 0xea5   :  { %4940 = vmatprep.mubr.msk.f32.mxu0 %vm1224_vm4, %v3758_v35  ;;  %v4399_v35 = vld [vmem:[%s6153_s0 + $0x6] ss:$0 sm:$0xff] }
 0xea6   :  { %v2178_v37 = vadd.f32 %v5850_v29, %v4399_v35  ;;  %v2188_v45 = vadd.f32 %v5854_v31, %v4399_v35 }
 0xf77   :  { %v3680_v33 = vpop.f32.mrb[36].mxu0 }
 0xf78   :  { %v4932_v24 = vpop.f32.mrb[37].mxu0  ;;  %4936 = vmatmul.mubr.msk.f32.vlgmr.msra.gmra.mrb[18].mxu1 %vm1224_vm4, %v3680_v33 }
 0xf79   :  { %4966 = vmatprep.mubr.msk.f32.mxu1 %vm179_vm1, %v5428_v0  ;;  %v3931_v0 = vld [vmem:[%s6121_s8 + $0x18] sm:$0xff]  ;;  %5147 = vmatpush3.bf16.msra.mxu1 %v5144_v22 }
 0xf7a   :  { %v5148_v40 = vpack.c.bf16 %v3931_v0, %v3930_v39  ;;  %v2173_v39 = vadd.f32 %v4399_v35, %v5852_v30 }
 0xf7c   :  { %5149 = vmatprep.subr.bf16.mxu1 %v5148_v40 }
 0xf7d   :  { %5151 = vmatpush3.bf16.msra.mxu1 %v5148_v40 }
 0xf7e   :  { %5153 = vmatprep.subr.bf16.mxu1 %v5152_v43 }
 0xf81   :  { %5155 = vmatpush3.bf16.msra.mxu1 %v5152_v43 }
 0xf82   :  { %5157 = vmatprep.subr.bf16.mxu1 %v5156_v49 }
 0xf85   :  { %5159 = vmatpush3.bf16.msra.mxu1 %v5156_v49  ;;  %v2183_v49 = vadd.f32 %v4399_v35, %v5856_v32 }
 0xf86   :  { %5173 = vmatprep.subr.bf16.mxu1 %v5172_v7 }
 0xf88   :  { %4967 = vmatmul.mubr.msk.f32.vlgmr.msra.gmra.mrb[24].mxu1 %vm179_vm1, %v5278_v51 }
 0xf89   :  { %4969 = vmatprep.mubr.msk.f32.mxu1 %vm179_vm1, %v5279_v55  ;;  %5175 = vmatpush3.bf16.msra.mxu1 %v5172_v7 }
 0xf8a   :  { %5177 = vmatprep.subr.bf16.mxu1 %v5176_v14 }
 0xf8c   :  { %4970 = vmatmul.mubr.msk.f32.gmra.mrb[26].mxu1 %vm179_vm1, %v5280_v56 }
 0xf8d   :  { %5179 = vmatpush3.bf16.msra.mxu1 %v5176_v14 }
0x104b   :  { %v3754_v3 = vpop.f32.mrb[18].mxu1 }
0x104c   :  { %v5182_v1 = vadd.f32 %v4427_v57, %v3754_v3  ;;  %v4937_v2 = vpop.f32.mrb[19].mxu1 }
0x104e   :  { %4938 = vmatprep.subr.mxu0 %v5182_v1 }
0x104f   :  { %4939 = vmatpush3.msra.mxu0 %v5182_v1 }
0x1050   :  { %4941 = vmatmul.mubr.msk.f32.vlgmr.msra.gmra.mrb[38].mxu0 %vm1224_vm4, %v3759_v5  ;;  %5141 = vmatprep.subr.bf16.mxu0 %v5140_v19 }
0x1051   :  { %5143 = vmatpush3.bf16.msra.mxu0 %v5140_v19 }
0x105b   :  { %v4968_v6 = vpop.f32.mrb[24].mxu1 }
0x105c   :  { %v4002_v9 = vpop.f32.mrb[25].mxu1 }
0x105d   :  { %v5160_v10 = vpack.c.bf16 %v4968_v6, %v4002_v9 }
0x105f   :  { %v4971_v11 = vpop.f32.mrb[26].mxu1  ;;  %5161 = vmatprep.subr.bf16.mxu0 %v5160_v10 }
0x1060   :  { %v4012_v12 = vpop.f32.mrb[27].mxu1 }
0x1061   :  { %v5164_v53 = vpack.c.bf16 %v4971_v11, %v4012_v12 }
0x1123   :  { %v4942_v44 = vpop.f32.mrb[38].mxu0 }
0x1124   :  { %v3832_v54 = vpop.f32.mrb[39].mxu0 }
0x1125   :  { %4947 = vmatprep.mubr.msk.f32.mxu0 %vm365_vm2, %v3832_v54 }
0x1126   :  { %4948 = vmatmul.mubr.msk.f32.vlgmr.msra.gmra.mrb[30].mxu0 %vm365_vm2, %v4942_v44 }
0x1127   :  { %5163 = vmatpush3.bf16.msra.mxu0 %v5160_v10  ;;  %4980 = vmatprep.mubr.msk.f32.mxu0 %vm89_vm0, %v3924_v59 }
0x1128   :  { %5165 = vmatprep.subr.bf16.mxu0 %v5164_v53 }
0x112b   :  { %5167 = vmatpush3.bf16.msra.mxu0 %v5164_v53 }
0x112e   :  { %4981 = vmatmul.mubr.msk.f32.vlgmr.msra.gmra.mrb[40].mxu0 %vm89_vm0, %v3925_v60 }
0x112f   :  { %4983 = vmatprep.mubr.msk.f32.mxu0 %vm89_vm0, %v3926_v46 }
0x1132   :  { %4984 = vmatmul.mubr.msk.f32.gmra.mrb[42].mxu0 %vm89_vm0, %v3927_v62 }
0x1133   :  { %4990 = vmatprep.mubr.msk.f32.mxu0 %vm365_vm2, %v4123_v63 }
0x11f9   :  { %v4949_v17 = vpop.f32.mrb[30].mxu0 }
0x11fa   :  { %v5180_v18 = vadd.f32 %v4949_v17, %v4420_v16  ;;  %v3915_v47 = vpop.f32.mrb[31].mxu0 }
0x11fb   :  { %v5181_v52 = vadd.f32 %v4420_v16, %v3915_v47 }
0x11fd   :  { %v5168_v42 = vpack.c.bf16 %v5180_v18, %v5181_v52 }
0x11ff   :  { %5169 = vmatprep.subr.bf16.mxu0 %v5168_v42 }
0x1200   :  { %5171 = vmatpush3.bf16.msra.mxu0 %v5168_v42 }
0x1201   :  { %v4982_v25 = vpop.f32.mrb[40].mxu0 }
0x1202   :  { %v4104_v26 = vpop.f32.mrb[41].mxu0  ;;  %v4110_v0 = vadd.f32 %v4982_v25, %v4447_v36 }
0x1203   :  { %4991 = vmatmul.mubr.msk.f32.vlgmr.msra.gmra.mrb[44].mxu0 %vm365_vm2, %v4124_v21  ;;  %v4105_v41 = vadd.f32 %v4447_v36, %v4104_v26 }
0x1204   :  { %4993 = vmatprep.mubr.msk.f32.mxu0 %vm365_vm2, %v4125_v4 }
0x1205   :  { %v4985_v27 = vpop.f32.mrb[42].mxu0 }
0x1206   :  { %v4114_v28 = vpop.f32.mrb[43].mxu0  ;;  %v4120_v56 = vadd.f32 %v4985_v27, %v4447_v36 }
0x1207   :  { %4994 = vmatmul.mubr.msk.f32.gmra.mrb[46].mxu0 %vm365_vm2, %v4126_v23  ;;  %v4115_v57 = vadd.f32 %v4447_v36, %v4114_v28 }
0x12d6   :  { %v4992_v15 = vpop.f32.mrb[44].mxu0 }
0x12d7   :  { %v4205_v34 = vpop.f32.mrb[45].mxu0 }
0x12d8   :  { %5004 = vmatprep.mubr.msk.f32.mxu1 %vm89_vm0, %v4205_v34 }
0x12d9   :  { %5005 = vmatmul.mubr.msk.f32.vlgmr.msra.gmra.mrb[28].mxu1 %vm89_vm0, %v4992_v15 }
0x12da   :  { %v4995_v33 = vpop.f32.mrb[46].mxu0 }
0x12db   :  { %v4215_v24 = vpop.f32.mrb[47].mxu0 }
0x12dc   :  { %5007 = vmatprep.mubr.msk.f32.mxu1 %vm89_vm0, %v4215_v24 }
0x12dd   :  { %5008 = vmatmul.mubr.msk.f32.gmra.mrb[30].mxu1 %vm89_vm0, %v4995_v33 }
0x13ac   :  { %v5006_v22 = vpop.f32.mrb[28].mxu1 }
0x13ad   :  { %v4326_v40 = vmul.f32 %v5006_v22, %v2178_v37  ;;  %v4306_v38 = vpop.f32.mrb[29].mxu1 }
0x13ae   :  { %v4325_v43 = vmul.f32 %v4306_v38, %v2173_v39 }
0x13af   :  { %v4330_v48 = vadd.f32 %v4326_v40, %v4110_v0 }
0x13b0   :  { %v4329_v51 = vadd.f32 %v4325_v43, %v4105_v41  ;;  %v5009_v55 = vpop.f32.mrb[30].mxu1 }
0x13b1   :  { %4334 = vst.msk [vmem:[%s6126_s26 + $0x8] sm:$0xff] %vm179_vm1, %v4330_v48  ;;  %v4328_v29 = vmul.f32 %v5009_v55, %v2188_v45  ;;  %v4316_v30 = vpop.f32.mrb[31].mxu1 }
0x13b2   :  { %4333 = vst.msk [vmem:[%s6126_s26] sm:$0xff] %vm179_vm1, %v4329_v51  ;;  %v4327_v31 = vmul.f32 %v4316_v30, %v2183_v49 }
0x13b3   :  { %v4332_v58 = vadd.f32 %v4328_v29, %v4120_v56 }
0x13b4   :  { %v4331_v61 = vadd.f32 %v4327_v31, %v4115_v57 }
0x13b5   :  { %4336 = vst.msk [vmem:[%s6126_s26 + $0x18] sm:$0xff] %vm179_vm1, %v4332_v58 }
0x13b6   :  { %4335 = vst.msk [vmem:[%s6126_s26 + $0x10] sm:$0xff] %vm179_vm1, %v4331_v61 }

</bundles_post_ra>
